<compile_context>
chip_gen: v6e
topology: v6e:2x2x1
jax: 0.10.0
libtpu: 0.0.40
codegen_flags: <defaults>
</compile_context>

<pallas_src>
import functools

import jax
import jax.numpy as jnp
from jax.experimental import pallas as pl
from jax.experimental.pallas import tpu as pltpu


def _xunitd_kernel(w1_ref, b1_ref, w2_ref, b2_ref, colid_ref, x_ref, o_ref, ybuf_ref,
                   *, H, W, K, pad, acc_dtype):
    # w1_ref : (Cp, Cp)        pointwise conv weights
    # b1_ref : (Cp, 1)         pointwise conv bias
    # w2_ref : (K*K, Cp, 1)    depthwise conv weights, one (Cp,1) column per tap
    # b2_ref : (Cp, 1)         depthwise conv bias
    # colid_ref : (1, L2) i32  column index of each flat position (tail = sentinel)
    # x_ref / o_ref : (Cp, L)  one batch item (leading batch dim squeezed away)
    # ybuf_ref : (Cp, L2)      staging buffer for y with a zero lane-tail
    Cp, L2 = ybuf_ref.shape
    L = H * W
    KK = K * K

    x = x_ref[...]                                       # (Cp, L)
    xf = x.astype(jnp.float32)

    # ---- 1x1 pointwise conv + bias + ReLU (MXU) ----
    y = jnp.dot(w1_ref[...], xf, preferred_element_type=jnp.float32)
    y = jnp.maximum(y + b1_ref[...], 0.0)                # (Cp, L) f32

    # ---- stage y with a zero lane-tail (>= pad*W zeros) ----
    # Rolls of +-dh*W wrap out-of-image rows into this zero tail, so no per-tap
    # row-validity mask is ever needed.
    ybuf_ref[...] = jnp.zeros_like(ybuf_ref)
    ybuf_ref[:, pl.ds(0, L)] = y.astype(acc_dtype)
    ybuf = ybuf_ref[...]                                 # (Cp, L2)

    # Hoisted parameter loads (once, outside the hot tap loop).
    colid = colid_ref[...]                               # (1, L2) int32
    wts = [w2_ref[t].astype(acc_dtype) for t in range(KK)]   # K*K x (Cp, 1)
    b2 = b2_ref[...].astype(acc_dtype)                   # (Cp, 1)

    acc = jnp.broadcast_to(b2, (Cp, L2))                 # depthwise bias init (hoisted)

    # ---- depthwise KxK conv: K column masks total, 2 VPU ops per tap ----
    for kw in range(K):
        dw = kw - pad
        if dw == 0:
            z = ybuf                                      # tail already zero
        else:
            rolled = pltpu.roll(ybuf, shift=(-dw) % L2, axis=1)
            valid = (colid + dw >= 0) & (colid + dw < W)  # (1, L2); sentinel tail -> False
            z = jnp.where(valid, rolled, 0.0)             # ONE select per kw
        for kh in range(K):
            dh = kh - pad
            s = dh * W
            shifted = z if s == 0 else pltpu.roll(z, shift=(-s) % L2, axis=1)
            acc = acc + wts[kh * K + kw] * shifted        # mul + add only (no mask)

    # ---- sigmoid on the EUP (exp + approximate reciprocal), then gate x ----
    accL = acc[:, :L].astype(jnp.float32)
    a = pl.reciprocal(1.0 + jnp.exp(-accL), approx=True)  # (Cp, L)
    o_ref[...] = (xf * a).astype(o_ref.dtype)


def xunitd_forward(x, w1, b1, w2, b2, *, elementwise_dtype=jnp.float32):
    """xUnitD forward.

    x : (N, C, H, W)
    w1: (C, C, 1, 1)  b1: (C,)      -- 1x1 conv
    w2: (C, 1, K, K)  b2: (C,)      -- depthwise KxK conv (groups=C)
    elementwise_dtype: dtype of the depthwise/tap path (jnp.bfloat16 recommended on
                       v6e/v7x for ~1.5-2x on the VPU-bound tap loop; f32 default).
    """
    N, C, H, W = x.shape
    K = w2.shape[-1]
    pad = K // 2
    L = H * W
    L2 = pl.cdiv(L + pad * W, 128) * 128      # staged y length (zero tail, lane aligned)
    Cp = pl.cdiv(C, 8) * 8

    x2 = x.reshape(N, C, L)                   # free reshape, no HBM copy
    if Cp != C:
        # Only when C % 8 != 0.  Module default c1=64 takes the pad-free fast path
        # (no extra HBM round trips on x or on the output).
        x2 = jnp.pad(x2, ((0, 0), (0, Cp - C), (0, 0)))

    f32 = jnp.float32
    w1_p = jnp.pad(w1.reshape(C, C).astype(f32), ((0, Cp - C), (0, Cp - C)))
    b1_p = jnp.pad(b1.reshape(C, 1).astype(f32), ((0, Cp - C), (0, 0)))
    # (C,1,K,K) -> (K*K, Cp, 1): w2_p[kh*K+kw, c, 0] = w2[c, 0, kh, kw]
    w2_p = jnp.transpose(w2.reshape(C, K * K).astype(f32), (1, 0))[:, :, None]
    w2_p = jnp.pad(w2_p, ((0, 0), (0, Cp - C), (0, 0)))
    b2_p = jnp.pad(b2.reshape(C, 1).astype(f32), ((0, Cp - C), (0, 0)))

    # Column index of each flat spatial position; sentinel in the zero tail so the
    # per-kw validity compare is always False there.
    colid = jnp.tile(jnp.arange(W, dtype=jnp.int32), H)
    colid = jnp.concatenate(
        [colid, jnp.full((L2 - L,), jnp.int32(-(1 << 20)))]).reshape(1, L2)

    # VMEM budget derived from the actual chip (feedback: don't hard-code 48 MiB).
    in_bytes = x.dtype.itemsize
    ew_bytes = jnp.dtype(elementwise_dtype).itemsize
    est = (2 * 2 * Cp * L * in_bytes          # double-buffered x and out blocks
           + Cp * L2 * ew_bytes               # ybuf scratch
           + 6 * Cp * L2 * 4                  # in-kernel temporaries (y/acc/z/shifted/a)
           + 2 * (Cp * Cp + Cp * K * K + 2 * Cp + L2) * 4)
    try:
        cap = int(pltpu.get_tpu_info().vmem_capacity_bytes)
    except Exception:
        cap = 64 * 1024 * 1024
    vmem_limit = int(max(32 * 1024 * 1024, min(est, cap - 8 * 1024 * 1024)))

    kernel = functools.partial(_xunitd_kernel, H=H, W=W, K=K, pad=pad,
                               acc_dtype=elementwise_dtype)

    out2 = pl.pallas_call(
        kernel,
        out_shape=jax.ShapeDtypeStruct((N, Cp, L), x.dtype),
        grid_spec=pltpu.PrefetchScalarGridSpec(
            num_scalar_prefetch=0,
            grid=(N,),
            in_specs=[
                pl.BlockSpec((Cp, Cp), lambda n: (0, 0)),          # w1 (constant idx)
                pl.BlockSpec((Cp, 1), lambda n: (0, 0)),           # b1
                pl.BlockSpec((K * K, Cp, 1), lambda n: (0, 0, 0)), # w2
                pl.BlockSpec((Cp, 1), lambda n: (0, 0)),           # b2
                pl.BlockSpec((1, L2), lambda n: (0, 0)),           # column ids
                pl.BlockSpec((None, Cp, L), lambda n: (n, 0, 0)),  # x (batch squeezed)
            ],
            out_specs=pl.BlockSpec((None, Cp, L), lambda n: (n, 0, 0)),
            scratch_shapes=[pltpu.VMEM((Cp, L2), elementwise_dtype)],
        ),
        compiler_params=pltpu.CompilerParams(
            dimension_semantics=("parallel",),      # batch items shard across TCs
            vmem_limit_bytes=vmem_limit,
        ),
    )(w1_p, b1_p, w2_p, b2_p, colid, x2)

    if Cp != C:
        out2 = out2[:, :C, :]
    return out2.reshape(N, C, H, W)


def xunitd_reference(x, w1, b1, w2, b2):
    """Pure-JAX reference (explicit pad + shifted slices), matches PyTorch semantics."""
    N, C, H, W = x.shape
    K = w2.shape[-1]
    pad = K // 2
    y = jnp.einsum("oi,nihw->nohw", w1.reshape(C, C), x) + b1.reshape(1, C, 1, 1)
    y = jnp.maximum(y, 0.0)
    yp = jnp.pad(y, ((0, 0), (0, 0), (pad, pad), (pad, pad)))
    a = jnp.zeros_like(y) + b2.reshape(1, C, 1, 1)
    for kh in range(K):
        for kw in range(K):
            a = a + w2[:, 0, kh, kw].reshape(1, C, 1, 1) * yp[:, :, kh:kh + H, kw:kw + W]
    a = jax.nn.sigmoid(a)
    return x * a


if __name__ == "__main__":
    key = jax.random.PRNGKey(0)
    k_x, k_w1, k_b1, k_w2, k_b2 = jax.random.split(key, 5)

    N, C, H, W, K = 2, 4, 16, 16, 7      # small shapes; module default kernel_size=7

    x = jax.random.normal(k_x, (N, C, H, W), dtype=jnp.float32)
    w1 = jax.random.normal(k_w1, (C, C, 1, 1), dtype=jnp.float32) * 0.5
    b1 = jax.random.normal(k_b1, (C,), dtype=jnp.float32) * 0.1
    w2 = jax.random.normal(k_w2, (C, 1, K, K), dtype=jnp.float32) * (1.0 / K)
    b2 = jax.random.normal(k_b2, (C,), dtype=jnp.float32) * 0.1

    out = xunitd_forward(x, w1, b1, w2, b2)
    out = jax.block_until_ready(out)

    ref = xunitd_reference(x, w1, b1, w2, b2)
    assert out.shape == (N, C, H, W)
    # Tolerance covers default-precision MXU f32 matmul and the EUP approximate
    # reciprocal used for the sigmoid; indexing bugs would show up as O(0.1-1) errors.
    err = float(jnp.max(jnp.abs(out - ref)))
    assert jnp.allclose(out, ref, atol=5e-3, rtol=5e-3), err

    print("KERNEL_OK")
</pallas_src>

<mosaic_0001>
module attributes {stable_mosaic.version = 11 : i64} {
  func.func @_xunitd_kernel(%arg0: i32, %arg1: memref<8x8xf32, #tpu.memory_space<vmem>>, %arg2: memref<8x1xf32, #tpu.memory_space<vmem>>, %arg3: memref<49x8x1xf32, #tpu.memory_space<vmem>>, %arg4: memref<8x1xf32, #tpu.memory_space<vmem>>, %arg5: memref<1x384xi32, #tpu.memory_space<vmem>>, %arg6: memref<1x8x256xf32, #tpu.memory_space<vmem>>, %arg7: memref<1x8x256xf32, #tpu.memory_space<vmem>>, %arg8: memref<8x384xf32, #tpu.memory_space<vmem>>) attributes {dimension_semantics = [#tpu.dimension_semantics<parallel>], iteration_bounds = array<i64: 2>, scalar_prefetch = 0 : i64, scratch_operands = 1 : i64, tpu.core_type = #tpu.core_type<tc>, window_params = [{pipeline_mode = #tpu.pipeline_mode<synchronous>, transform_indices = @transform_0, window_bounds = array<i64: 8, 8>}, {pipeline_mode = #tpu.pipeline_mode<synchronous>, transform_indices = @transform_1, window_bounds = array<i64: 8, 1>}, {pipeline_mode = #tpu.pipeline_mode<synchronous>, transform_indices = @transform_2, window_bounds = array<i64: 49, 8, 1>}, {pipeline_mode = #tpu.pipeline_mode<synchronous>, transform_indices = @transform_3, window_bounds = array<i64: 8, 1>}, {pipeline_mode = #tpu.pipeline_mode<synchronous>, transform_indices = @transform_4, window_bounds = array<i64: 1, 384>}, {transform_indices = @transform_5, window_bounds = array<i64: 1, 8, 256>}, {transform_indices = @transform_6, window_bounds = array<i64: 1, 8, 256>}]} {
    %c0 = arith.constant 0 : index
    %c0_0 = arith.constant 0 : index
    %c0_1 = arith.constant 0 : index
    %0 = vector.load %arg6[%c0, %c0_0, %c0_1] : memref<1x8x256xf32, #tpu.memory_space<vmem>>, vector<1x8x256xf32>
    %1 = vector.shape_cast %0 : vector<1x8x256xf32> to vector<8x256xf32>
    %c0_2 = arith.constant 0 : index
    %c0_3 = arith.constant 0 : index
    %2 = vector.load %arg1[%c0_2, %c0_3] : memref<8x8xf32, #tpu.memory_space<vmem>>, vector<8x8xf32>
    %cst = arith.constant dense<0.000000e+00> : vector<8x256xf32>
    %3 = tpu.matmul %2, %1, %cst {dimension_numbers = #tpu.dot_dimension_numbers<[1], [0], [0], [1], [0, 0, 1, 1], [], []>} : vector<8x8xf32>, vector<8x256xf32>, vector<8x256xf32> -> vector<8x256xf32>
    %c0_4 = arith.constant 0 : index
    %c0_5 = arith.constant 0 : index
    %4 = vector.load %arg2[%c0_4, %c0_5] : memref<8x1xf32, #tpu.memory_space<vmem>>, vector<8x1xf32>
    %5 = vector.broadcast %4 : vector<8x1xf32> to vector<8x256xf32>
    %6 = arith.addf %3, %5 : vector<8x256xf32>
    %cst_6 = arith.constant 0.000000e+00 : f32
    %7 = vector.broadcast %cst_6 : f32 to vector<8x256xf32>
    %8 = arith.maximumf %6, %7 : vector<8x256xf32>
    %cst_7 = arith.constant 0.000000e+00 : f32
    %9 = vector.broadcast %cst_7 : f32 to vector<8x384xf32>
    %c0_8 = arith.constant 0 : index
    %c0_9 = arith.constant 0 : index
    %10 = vector.load %arg8[%c0_8, %c0_9] : memref<8x384xf32, #tpu.memory_space<vmem>>, vector<8x384xf32>
    tpu.vector_store %arg8[%c0_8, %c0_9], %9 {strides = array<i32>} : memref<8x384xf32, #tpu.memory_space<vmem>>, vector<8x384xf32>,
    %c0_10 = arith.constant 0 : index
    %c0_11 = arith.constant 0 : index
    %11 = vector.load %arg8[%c0_10, %c0_11] : memref<8x384xf32, #tpu.memory_space<vmem>>, vector<8x256xf32>
    tpu.vector_store %arg8[%c0_10, %c0_11], %8 {strides = array<i32>} : memref<8x384xf32, #tpu.memory_space<vmem>>, vector<8x256xf32>,
    %c0_12 = arith.constant 0 : index
    %c0_13 = arith.constant 0 : index
    %12 = vector.load %arg8[%c0_12, %c0_13] : memref<8x384xf32, #tpu.memory_space<vmem>>, vector<8x384xf32>
    %c0_14 = arith.constant 0 : index
    %c0_15 = arith.constant 0 : index
    %13 = vector.load %arg5[%c0_14, %c0_15] : memref<1x384xi32, #tpu.memory_space<vmem>>, vector<1x384xi32>
    %c0_16 = arith.constant 0 : index
    %c0_17 = arith.constant 0 : index
    %c0_18 = arith.constant 0 : index
    %14 = vector.load %arg3[%c0_16, %c0_17, %c0_18] : memref<49x8x1xf32, #tpu.memory_space<vmem>>, vector<1x8x1xf32>
    %15 = vector.shape_cast %14 : vector<1x8x1xf32> to vector<8x1xf32>
    %c1 = arith.constant 1 : index
    %c0_19 = arith.constant 0 : index
    %c0_20 = arith.constant 0 : index
    %16 = vector.load %arg3[%c1, %c0_19, %c0_20] : memref<49x8x1xf32, #tpu.memory_space<vmem>>, vector<1x8x1xf32>
    %17 = vector.shape_cast %16 : vector<1x8x1xf32> to vector<8x1xf32>
    %c2 = arith.constant 2 : index
    %c0_21 = arith.constant 0 : index
    %c0_22 = arith.constant 0 : index
    %18 = vector.load %arg3[%c2, %c0_21, %c0_22] : memref<49x8x1xf32, #tpu.memory_space<vmem>>, vector<1x8x1xf32>
    %19 = vector.shape_cast %18 : vector<1x8x1xf32> to vector<8x1xf32>
    %c3 = arith.constant 3 : index
    %c0_23 = arith.constant 0 : index
    %c0_24 = arith.constant 0 : index
    %20 = vector.load %arg3[%c3, %c0_23, %c0_24] : memref<49x8x1xf32, #tpu.memory_space<vmem>>, vector<1x8x1xf32>
    %21 = vector.shape_cast %20 : vector<1x8x1xf32> to vector<8x1xf32>
    %c4 = arith.constant 4 : index
    %c0_25 = arith.constant 0 : index
    %c0_26 = arith.constant 0 : index
    %22 = vector.load %arg3[%c4, %c0_25, %c0_26] : memref<49x8x1xf32, #tpu.memory_space<vmem>>, vector<1x8x1xf32>
    %23 = vector.shape_cast %22 : vector<1x8x1xf32> to vector<8x1xf32>
    %c5 = arith.constant 5 : index
    %c0_27 = arith.constant 0 : index
    %c0_28 = arith.constant 0 : index
    %24 = vector.load %arg3[%c5, %c0_27, %c0_28] : memref<49x8x1xf32, #tpu.memory_space<vmem>>, vector<1x8x1xf32>
    %25 = vector.shape_cast %24 : vector<1x8x1xf32> to vector<8x1xf32>
    %c6 = arith.constant 6 : index
    %c0_29 = arith.constant 0 : index
    %c0_30 = arith.constant 0 : index
    %26 = vector.load %arg3[%c6, %c0_29, %c0_30] : memref<49x8x1xf32, #tpu.memory_space<vmem>>, vector<1x8x1xf32>
    %27 = vector.shape_cast %26 : vector<1x8x1xf32> to vector<8x1xf32>
    %c7 = arith.constant 7 : index
    %c0_31 = arith.constant 0 : index
    %c0_32 = arith.constant 0 : index
    %28 = vector.load %arg3[%c7, %c0_31, %c0_32] : memref<49x8x1xf32, #tpu.memory_space<vmem>>, vector<1x8x1xf32>
    %29 = vector.shape_cast %28 : vector<1x8x1xf32> to vector<8x1xf32>
    %c8 = arith.constant 8 : index
    %c0_33 = arith.constant 0 : index
    %c0_34 = arith.constant 0 : index
    %30 = vector.load %arg3[%c8, %c0_33, %c0_34] : memref<49x8x1xf32, #tpu.memory_space<vmem>>, vector<1x8x1xf32>
    %31 = vector.shape_cast %30 : vector<1x8x1xf32> to vector<8x1xf32>
    %c9 = arith.constant 9 : index
    %c0_35 = arith.constant 0 : index
    %c0_36 = arith.constant 0 : index
    %32 = vector.load %arg3[%c9, %c0_35, %c0_36] : memref<49x8x1xf32, #tpu.memory_space<vmem>>, vector<1x8x1xf32>
    %33 = vector.shape_cast %32 : vector<1x8x1xf32> to vector<8x1xf32>
    %c10 = arith.constant 10 : index
    %c0_37 = arith.constant 0 : index
    %c0_38 = arith.constant 0 : index
    %34 = vector.load %arg3[%c10, %c0_37, %c0_38] : memref<49x8x1xf32, #tpu.memory_space<vmem>>, vector<1x8x1xf32>
    %35 = vector.shape_cast %34 : vector<1x8x1xf32> to vector<8x1xf32>
    %c11 = arith.constant 11 : index
    %c0_39 = arith.constant 0 : index
    %c0_40 = arith.constant 0 : index
    %36 = vector.load %arg3[%c11, %c0_39, %c0_40] : memref<49x8x1xf32, #tpu.memory_space<vmem>>, vector<1x8x1xf32>
    %37 = vector.shape_cast %36 : vector<1x8x1xf32> to vector<8x1xf32>
    %c12 = arith.constant 12 : index
    %c0_41 = arith.constant 0 : index
    %c0_42 = arith.constant 0 : index
    %38 = vector.load %arg3[%c12, %c0_41, %c0_42] : memref<49x8x1xf32, #tpu.memory_space<vmem>>, vector<1x8x1xf32>
    %39 = vector.shape_cast %38 : vector<1x8x1xf32> to vector<8x1xf32>
    %c13 = arith.constant 13 : index
    %c0_43 = arith.constant 0 : index
    %c0_44 = arith.constant 0 : index
    %40 = vector.load %arg3[%c13, %c0_43, %c0_44] : memref<49x8x1xf32, #tpu.memory_space<vmem>>, vector<1x8x1xf32>
    %41 = vector.shape_cast %40 : vector<1x8x1xf32> to vector<8x1xf32>
    %c14 = arith.constant 14 : index
    %c0_45 = arith.constant 0 : index
    %c0_46 = arith.constant 0 : index
    %42 = vector.load %arg3[%c14, %c0_45, %c0_46] : memref<49x8x1xf32, #tpu.memory_space<vmem>>, vector<1x8x1xf32>
    %43 = vector.shape_cast %42 : vector<1x8x1xf32> to vector<8x1xf32>
    %c15 = arith.constant 15 : index
    %c0_47 = arith.constant 0 : index
    %c0_48 = arith.constant 0 : index
    %44 = vector.load %arg3[%c15, %c0_47, %c0_48] : memref<49x8x1xf32, #tpu.memory_space<vmem>>, vector<1x8x1xf32>
    %45 = vector.shape_cast %44 : vector<1x8x1xf32> to vector<8x1xf32>
    %c16 = arith.constant 16 : index
    %c0_49 = arith.constant 0 : index
    %c0_50 = arith.constant 0 : index
    %46 = vector.load %arg3[%c16, %c0_49, %c0_50] : memref<49x8x1xf32, #tpu.memory_space<vmem>>, vector<1x8x1xf32>
    %47 = vector.shape_cast %46 : vector<1x8x1xf32> to vector<8x1xf32>
    %c17 = arith.constant 17 : index
    %c0_51 = arith.constant 0 : index
    %c0_52 = arith.constant 0 : index
    %48 = vector.load %arg3[%c17, %c0_51, %c0_52] : memref<49x8x1xf32, #tpu.memory_space<vmem>>, vector<1x8x1xf32>
    %49 = vector.shape_cast %48 : vector<1x8x1xf32> to vector<8x1xf32>
    %c18 = arith.constant 18 : index
    %c0_53 = arith.constant 0 : index
    %c0_54 = arith.constant 0 : index
    %50 = vector.load %arg3[%c18, %c0_53, %c0_54] : memref<49x8x1xf32, #tpu.memory_space<vmem>>, vector<1x8x1xf32>
    %51 = vector.shape_cast %50 : vector<1x8x1xf32> to vector<8x1xf32>
    %c19 = arith.constant 19 : index
    %c0_55 = arith.constant 0 : index
    %c0_56 = arith.constant 0 : index
    %52 = vector.load %arg3[%c19, %c0_55, %c0_56] : memref<49x8x1xf32, #tpu.memory_space<vmem>>, vector<1x8x1xf32>
    %53 = vector.shape_cast %52 : vector<1x8x1xf32> to vector<8x1xf32>
    %c20 = arith.constant 20 : index
    %c0_57 = arith.constant 0 : index
    %c0_58 = arith.constant 0 : index
    %54 = vector.load %arg3[%c20, %c0_57, %c0_58] : memref<49x8x1xf32, #tpu.memory_space<vmem>>, vector<1x8x1xf32>
    %55 = vector.shape_cast %54 : vector<1x8x1xf32> to vector<8x1xf32>
    %c21 = arith.constant 21 : index
    %c0_59 = arith.constant 0 : index
    %c0_60 = arith.constant 0 : index
    %56 = vector.load %arg3[%c21, %c0_59, %c0_60] : memref<49x8x1xf32, #tpu.memory_space<vmem>>, vector<1x8x1xf32>
    %57 = vector.shape_cast %56 : vector<1x8x1xf32> to vector<8x1xf32>
    %c22 = arith.constant 22 : index
    %c0_61 = arith.constant 0 : index
    %c0_62 = arith.constant 0 : index
    %58 = vector.load %arg3[%c22, %c0_61, %c0_62] : memref<49x8x1xf32, #tpu.memory_space<vmem>>, vector<1x8x1xf32>
    %59 = vector.shape_cast %58 : vector<1x8x1xf32> to vector<8x1xf32>
    %c23 = arith.constant 23 : index
    %c0_63 = arith.constant 0 : index
    %c0_64 = arith.constant 0 : index
    %60 = vector.load %arg3[%c23, %c0_63, %c0_64] : memref<49x8x1xf32, #tpu.memory_space<vmem>>, vector<1x8x1xf32>
    %61 = vector.shape_cast %60 : vector<1x8x1xf32> to vector<8x1xf32>
    %c24 = arith.constant 24 : index
    %c0_65 = arith.constant 0 : index
    %c0_66 = arith.constant 0 : index
    %62 = vector.load %arg3[%c24, %c0_65, %c0_66] : memref<49x8x1xf32, #tpu.memory_space<vmem>>, vector<1x8x1xf32>
    %63 = vector.shape_cast %62 : vector<1x8x1xf32> to vector<8x1xf32>
    %c25 = arith.constant 25 : index
    %c0_67 = arith.constant 0 : index
    %c0_68 = arith.constant 0 : index
    %64 = vector.load %arg3[%c25, %c0_67, %c0_68] : memref<49x8x1xf32, #tpu.memory_space<vmem>>, vector<1x8x1xf32>
    %65 = vector.shape_cast %64 : vector<1x8x1xf32> to vector<8x1xf32>
    %c26 = arith.constant 26 : index
    %c0_69 = arith.constant 0 : index
    %c0_70 = arith.constant 0 : index
    %66 = vector.load %arg3[%c26, %c0_69, %c0_70] : memref<49x8x1xf32, #tpu.memory_space<vmem>>, vector<1x8x1xf32>
    %67 = vector.shape_cast %66 : vector<1x8x1xf32> to vector<8x1xf32>
    %c27 = arith.constant 27 : index
    %c0_71 = arith.constant 0 : index
    %c0_72 = arith.constant 0 : index
    %68 = vector.load %arg3[%c27, %c0_71, %c0_72] : memref<49x8x1xf32, #tpu.memory_space<vmem>>, vector<1x8x1xf32>
    %69 = vector.shape_cast %68 : vector<1x8x1xf32> to vector<8x1xf32>
    %c28 = arith.constant 28 : index
    %c0_73 = arith.constant 0 : index
    %c0_74 = arith.constant 0 : index
    %70 = vector.load %arg3[%c28, %c0_73, %c0_74] : memref<49x8x1xf32, #tpu.memory_space<vmem>>, vector<1x8x1xf32>
    %71 = vector.shape_cast %70 : vector<1x8x1xf32> to vector<8x1xf32>
    %c29 = arith.constant 29 : index
    %c0_75 = arith.constant 0 : index
    %c0_76 = arith.constant 0 : index
    %72 = vector.load %arg3[%c29, %c0_75, %c0_76] : memref<49x8x1xf32, #tpu.memory_space<vmem>>, vector<1x8x1xf32>
    %73 = vector.shape_cast %72 : vector<1x8x1xf32> to vector<8x1xf32>
    %c30 = arith.constant 30 : index
    %c0_77 = arith.constant 0 : index
    %c0_78 = arith.constant 0 : index
    %74 = vector.load %arg3[%c30, %c0_77, %c0_78] : memref<49x8x1xf32, #tpu.memory_space<vmem>>, vector<1x8x1xf32>
    %75 = vector.shape_cast %74 : vector<1x8x1xf32> to vector<8x1xf32>
    %c31 = arith.constant 31 : index
    %c0_79 = arith.constant 0 : index
    %c0_80 = arith.constant 0 : index
    %76 = vector.load %arg3[%c31, %c0_79, %c0_80] : memref<49x8x1xf32, #tpu.memory_space<vmem>>, vector<1x8x1xf32>
    %77 = vector.shape_cast %76 : vector<1x8x1xf32> to vector<8x1xf32>
    %c32 = arith.constant 32 : index
    %c0_81 = arith.constant 0 : index
    %c0_82 = arith.constant 0 : index
    %78 = vector.load %arg3[%c32, %c0_81, %c0_82] : memref<49x8x1xf32, #tpu.memory_space<vmem>>, vector<1x8x1xf32>
    %79 = vector.shape_cast %78 : vector<1x8x1xf32> to vector<8x1xf32>
    %c33 = arith.constant 33 : index
    %c0_83 = arith.constant 0 : index
    %c0_84 = arith.constant 0 : index
    %80 = vector.load %arg3[%c33, %c0_83, %c0_84] : memref<49x8x1xf32, #tpu.memory_space<vmem>>, vector<1x8x1xf32>
    %81 = vector.shape_cast %80 : vector<1x8x1xf32> to vector<8x1xf32>
    %c34 = arith.constant 34 : index
    %c0_85 = arith.constant 0 : index
    %c0_86 = arith.constant 0 : index
    %82 = vector.load %arg3[%c34, %c0_85, %c0_86] : memref<49x8x1xf32, #tpu.memory_space<vmem>>, vector<1x8x1xf32>
    %83 = vector.shape_cast %82 : vector<1x8x1xf32> to vector<8x1xf32>
    %c35 = arith.constant 35 : index
    %c0_87 = arith.constant 0 : index
    %c0_88 = arith.constant 0 : index
    %84 = vector.load %arg3[%c35, %c0_87, %c0_88] : memref<49x8x1xf32, #tpu.memory_space<vmem>>, vector<1x8x1xf32>
    %85 = vector.shape_cast %84 : vector<1x8x1xf32> to vector<8x1xf32>
    %c36 = arith.constant 36 : index
    %c0_89 = arith.constant 0 : index
    %c0_90 = arith.constant 0 : index
    %86 = vector.load %arg3[%c36, %c0_89, %c0_90] : memref<49x8x1xf32, #tpu.memory_space<vmem>>, vector<1x8x1xf32>
    %87 = vector.shape_cast %86 : vector<1x8x1xf32> to vector<8x1xf32>
    %c37 = arith.constant 37 : index
    %c0_91 = arith.constant 0 : index
    %c0_92 = arith.constant 0 : index
    %88 = vector.load %arg3[%c37, %c0_91, %c0_92] : memref<49x8x1xf32, #tpu.memory_space<vmem>>, vector<1x8x1xf32>
    %89 = vector.shape_cast %88 : vector<1x8x1xf32> to vector<8x1xf32>
    %c38 = arith.constant 38 : index
    %c0_93 = arith.constant 0 : index
    %c0_94 = arith.constant 0 : index
    %90 = vector.load %arg3[%c38, %c0_93, %c0_94] : memref<49x8x1xf32, #tpu.memory_space<vmem>>, vector<1x8x1xf32>
    %91 = vector.shape_cast %90 : vector<1x8x1xf32> to vector<8x1xf32>
    %c39 = arith.constant 39 : index
    %c0_95 = arith.constant 0 : index
    %c0_96 = arith.constant 0 : index
    %92 = vector.load %arg3[%c39, %c0_95, %c0_96] : memref<49x8x1xf32, #tpu.memory_space<vmem>>, vector<1x8x1xf32>
    %93 = vector.shape_cast %92 : vector<1x8x1xf32> to vector<8x1xf32>
    %c40 = arith.constant 40 : index
    %c0_97 = arith.constant 0 : index
    %c0_98 = arith.constant 0 : index
    %94 = vector.load %arg3[%c40, %c0_97, %c0_98] : memref<49x8x1xf32, #tpu.memory_space<vmem>>, vector<1x8x1xf32>
    %95 = vector.shape_cast %94 : vector<1x8x1xf32> to vector<8x1xf32>
    %c41 = arith.constant 41 : index
    %c0_99 = arith.constant 0 : index
    %c0_100 = arith.constant 0 : index
    %96 = vector.load %arg3[%c41, %c0_99, %c0_100] : memref<49x8x1xf32, #tpu.memory_space<vmem>>, vector<1x8x1xf32>
    %97 = vector.shape_cast %96 : vector<1x8x1xf32> to vector<8x1xf32>
    %c42 = arith.constant 42 : index
    %c0_101 = arith.constant 0 : index
    %c0_102 = arith.constant 0 : index
    %98 = vector.load %arg3[%c42, %c0_101, %c0_102] : memref<49x8x1xf32, #tpu.memory_space<vmem>>, vector<1x8x1xf32>
    %99 = vector.shape_cast %98 : vector<1x8x1xf32> to vector<8x1xf32>
    %c43 = arith.constant 43 : index
    %c0_103 = arith.constant 0 : index
    %c0_104 = arith.constant 0 : index
    %100 = vector.load %arg3[%c43, %c0_103, %c0_104] : memref<49x8x1xf32, #tpu.memory_space<vmem>>, vector<1x8x1xf32>
    %101 = vector.shape_cast %100 : vector<1x8x1xf32> to vector<8x1xf32>
    %c44 = arith.constant 44 : index
    %c0_105 = arith.constant 0 : index
    %c0_106 = arith.constant 0 : index
    %102 = vector.load %arg3[%c44, %c0_105, %c0_106] : memref<49x8x1xf32, #tpu.memory_space<vmem>>, vector<1x8x1xf32>
    %103 = vector.shape_cast %102 : vector<1x8x1xf32> to vector<8x1xf32>
    %c45 = arith.constant 45 : index
    %c0_107 = arith.constant 0 : index
    %c0_108 = arith.constant 0 : index
    %104 = vector.load %arg3[%c45, %c0_107, %c0_108] : memref<49x8x1xf32, #tpu.memory_space<vmem>>, vector<1x8x1xf32>
    %105 = vector.shape_cast %104 : vector<1x8x1xf32> to vector<8x1xf32>
    %c46 = arith.constant 46 : index
    %c0_109 = arith.constant 0 : index
    %c0_110 = arith.constant 0 : index
    %106 = vector.load %arg3[%c46, %c0_109, %c0_110] : memref<49x8x1xf32, #tpu.memory_space<vmem>>, vector<1x8x1xf32>
    %107 = vector.shape_cast %106 : vector<1x8x1xf32> to vector<8x1xf32>
    %c47 = arith.constant 47 : index
    %c0_111 = arith.constant 0 : index
    %c0_112 = arith.constant 0 : index
    %108 = vector.load %arg3[%c47, %c0_111, %c0_112] : memref<49x8x1xf32, #tpu.memory_space<vmem>>, vector<1x8x1xf32>
    %109 = vector.shape_cast %108 : vector<1x8x1xf32> to vector<8x1xf32>
    %c48 = arith.constant 48 : index
    %c0_113 = arith.constant 0 : index
    %c0_114 = arith.constant 0 : index
    %110 = vector.load %arg3[%c48, %c0_113, %c0_114] : memref<49x8x1xf32, #tpu.memory_space<vmem>>, vector<1x8x1xf32>
    %111 = vector.shape_cast %110 : vector<1x8x1xf32> to vector<8x1xf32>
    %c0_115 = arith.constant 0 : index
    %c0_116 = arith.constant 0 : index
    %112 = vector.load %arg4[%c0_115, %c0_116] : memref<8x1xf32, #tpu.memory_space<vmem>>, vector<8x1xf32>
    %113 = vector.shape_cast %112 : vector<8x1xf32> to vector<8x1xf32>
    %114 = vector.broadcast %113 : vector<8x1xf32> to vector<8x384xf32>
    %c3_i32 = arith.constant 3 : i32
    %115 = tpu.dynamic_rotate %12 by %c3_i32 dim 1 : vector<8x384xf32>, i32 -> vector<8x384xf32>
    %c-3_i32 = arith.constant -3 : i32
    %116 = vector.broadcast %c-3_i32 : i32 to vector<1x384xi32>
    %117 = arith.addi %13, %116 : vector<1x384xi32>
    %c0_i32 = arith.constant 0 : i32
    %118 = vector.broadcast %c0_i32 : i32 to vector<1x384xi32>
    %119 = arith.cmpi sge, %117, %118 : vector<1x384xi32>
    %c-3_i32_117 = arith.constant -3 : i32
    %120 = vector.broadcast %c-3_i32_117 : i32 to vector<1x384xi32>
    %121 = arith.addi %13, %120 : vector<1x384xi32>
    %c16_i32 = arith.constant 16 : i32
    %122 = vector.broadcast %c16_i32 : i32 to vector<1x384xi32>
    %123 = arith.cmpi slt, %121, %122 : vector<1x384xi32>
    %124 = arith.andi %119, %123 : vector<1x384xi1>
    %cst_118 = arith.constant 0.000000e+00 : f32
    %125 = vector.shape_cast %124 : vector<1x384xi1> to vector<1x384xi1>
    %126 = vector.broadcast %125 : vector<1x384xi1> to vector<8x384xi1>
    %127 = vector.broadcast %cst_118 : f32 to vector<8x384xf32>
    %128 = arith.select %126, %115, %127 : vector<8x384xi1>, vector<8x384xf32>
    %c48_i32 = arith.constant 48 : i32
    %129 = tpu.dynamic_rotate %128 by %c48_i32 dim 1 : vector<8x384xf32>, i32 -> vector<8x384xf32>
    %130 = vector.broadcast %15 : vector<8x1xf32> to vector<8x384xf32>
    %131 = arith.mulf %130, %129 : vector<8x384xf32>
    %132 = arith.addf %114, %131 : vector<8x384xf32>
    %c32_i32 = arith.constant 32 : i32
    %133 = tpu.dynamic_rotate %128 by %c32_i32 dim 1 : vector<8x384xf32>, i32 -> vector<8x384xf32>
    %134 = vector.broadcast %29 : vector<8x1xf32> to vector<8x384xf32>
    %135 = arith.mulf %134, %133 : vector<8x384xf32>
    %136 = arith.addf %132, %135 : vector<8x384xf32>
    %c16_i32_119 = arith.constant 16 : i32
    %137 = tpu.dynamic_rotate %128 by %c16_i32_119 dim 1 : vector<8x384xf32>, i32 -> vector<8x384xf32>
    %138 = vector.broadcast %43 : vector<8x1xf32> to vector<8x384xf32>
    %139 = arith.mulf %138, %137 : vector<8x384xf32>
    %140 = arith.addf %136, %139 : vector<8x384xf32>
    %141 = vector.broadcast %57 : vector<8x1xf32> to vector<8x384xf32>
    %142 = arith.mulf %141, %128 : vector<8x384xf32>
    %143 = arith.addf %140, %142 : vector<8x384xf32>
    %c368_i32 = arith.constant 368 : i32
    %144 = tpu.dynamic_rotate %128 by %c368_i32 dim 1 : vector<8x384xf32>, i32 -> vector<8x384xf32>
    %145 = vector.broadcast %71 : vector<8x1xf32> to vector<8x384xf32>
    %146 = arith.mulf %145, %144 : vector<8x384xf32>
    %147 = arith.addf %143, %146 : vector<8x384xf32>
    %c352_i32 = arith.constant 352 : i32
    %148 = tpu.dynamic_rotate %128 by %c352_i32 dim 1 : vector<8x384xf32>, i32 -> vector<8x384xf32>
    %149 = vector.broadcast %85 : vector<8x1xf32> to vector<8x384xf32>
    %150 = arith.mulf %149, %148 : vector<8x384xf32>
    %151 = arith.addf %147, %150 : vector<8x384xf32>
    %c336_i32 = arith.constant 336 : i32
    %152 = tpu.dynamic_rotate %128 by %c336_i32 dim 1 : vector<8x384xf32>, i32 -> vector<8x384xf32>
    %153 = vector.broadcast %99 : vector<8x1xf32> to vector<8x384xf32>
    %154 = arith.mulf %153, %152 : vector<8x384xf32>
    %155 = arith.addf %151, %154 : vector<8x384xf32>
    %c2_i32 = arith.constant 2 : i32
    %156 = tpu.dynamic_rotate %12 by %c2_i32 dim 1 : vector<8x384xf32>, i32 -> vector<8x384xf32>
    %c-2_i32 = arith.constant -2 : i32
    %157 = vector.broadcast %c-2_i32 : i32 to vector<1x384xi32>
    %158 = arith.addi %13, %157 : vector<1x384xi32>
    %c0_i32_120 = arith.constant 0 : i32
    %159 = vector.broadcast %c0_i32_120 : i32 to vector<1x384xi32>
    %160 = arith.cmpi sge, %158, %159 : vector<1x384xi32>
    %c-2_i32_121 = arith.constant -2 : i32
    %161 = vector.broadcast %c-2_i32_121 : i32 to vector<1x384xi32>
    %162 = arith.addi %13, %161 : vector<1x384xi32>
    %c16_i32_122 = arith.constant 16 : i32
    %163 = vector.broadcast %c16_i32_122 : i32 to vector<1x384xi32>
    %164 = arith.cmpi slt, %162, %163 : vector<1x384xi32>
    %165 = arith.andi %160, %164 : vector<1x384xi1>
    %cst_123 = arith.constant 0.000000e+00 : f32
    %166 = vector.shape_cast %165 : vector<1x384xi1> to vector<1x384xi1>
    %167 = vector.broadcast %166 : vector<1x384xi1> to vector<8x384xi1>
    %168 = vector.broadcast %cst_123 : f32 to vector<8x384xf32>
    %169 = arith.select %167, %156, %168 : vector<8x384xi1>, vector<8x384xf32>
    %c48_i32_124 = arith.constant 48 : i32
    %170 = tpu.dynamic_rotate %169 by %c48_i32_124 dim 1 : vector<8x384xf32>, i32 -> vector<8x384xf32>
    %171 = vector.broadcast %17 : vector<8x1xf32> to vector<8x384xf32>
    %172 = arith.mulf %171, %170 : vector<8x384xf32>
    %173 = arith.addf %155, %172 : vector<8x384xf32>
    %c32_i32_125 = arith.constant 32 : i32
    %174 = tpu.dynamic_rotate %169 by %c32_i32_125 dim 1 : vector<8x384xf32>, i32 -> vector<8x384xf32>
    %175 = vector.broadcast %31 : vector<8x1xf32> to vector<8x384xf32>
    %176 = arith.mulf %175, %174 : vector<8x384xf32>
    %177 = arith.addf %173, %176 : vector<8x384xf32>
    %c16_i32_126 = arith.constant 16 : i32
    %178 = tpu.dynamic_rotate %169 by %c16_i32_126 dim 1 : vector<8x384xf32>, i32 -> vector<8x384xf32>
    %179 = vector.broadcast %45 : vector<8x1xf32> to vector<8x384xf32>
    %180 = arith.mulf %179, %178 : vector<8x384xf32>
    %181 = arith.addf %177, %180 : vector<8x384xf32>
    %182 = vector.broadcast %59 : vector<8x1xf32> to vector<8x384xf32>
    %183 = arith.mulf %182, %169 : vector<8x384xf32>
    %184 = arith.addf %181, %183 : vector<8x384xf32>
    %c368_i32_127 = arith.constant 368 : i32
    %185 = tpu.dynamic_rotate %169 by %c368_i32_127 dim 1 : vector<8x384xf32>, i32 -> vector<8x384xf32>
    %186 = vector.broadcast %73 : vector<8x1xf32> to vector<8x384xf32>
    %187 = arith.mulf %186, %185 : vector<8x384xf32>
    %188 = arith.addf %184, %187 : vector<8x384xf32>
    %c352_i32_128 = arith.constant 352 : i32
    %189 = tpu.dynamic_rotate %169 by %c352_i32_128 dim 1 : vector<8x384xf32>, i32 -> vector<8x384xf32>
    %190 = vector.broadcast %87 : vector<8x1xf32> to vector<8x384xf32>
    %191 = arith.mulf %190, %189 : vector<8x384xf32>
    %192 = arith.addf %188, %191 : vector<8x384xf32>
    %c336_i32_129 = arith.constant 336 : i32
    %193 = tpu.dynamic_rotate %169 by %c336_i32_129 dim 1 : vector<8x384xf32>, i32 -> vector<8x384xf32>
    %194 = vector.broadcast %101 : vector<8x1xf32> to vector<8x384xf32>
    %195 = arith.mulf %194, %193 : vector<8x384xf32>
    %196 = arith.addf %192, %195 : vector<8x384xf32>
    %c1_i32 = arith.constant 1 : i32
    %197 = tpu.dynamic_rotate %12 by %c1_i32 dim 1 : vector<8x384xf32>, i32 -> vector<8x384xf32>
    %c-1_i32 = arith.constant -1 : i32
    %198 = vector.broadcast %c-1_i32 : i32 to vector<1x384xi32>
    %199 = arith.addi %13, %198 : vector<1x384xi32>
    %c0_i32_130 = arith.constant 0 : i32
    %200 = vector.broadcast %c0_i32_130 : i32 to vector<1x384xi32>
    %201 = arith.cmpi sge, %199, %200 : vector<1x384xi32>
    %c-1_i32_131 = arith.constant -1 : i32
    %202 = vector.broadcast %c-1_i32_131 : i32 to vector<1x384xi32>
    %203 = arith.addi %13, %202 : vector<1x384xi32>
    %c16_i32_132 = arith.constant 16 : i32
    %204 = vector.broadcast %c16_i32_132 : i32 to vector<1x384xi32>
    %205 = arith.cmpi slt, %203, %204 : vector<1x384xi32>
    %206 = arith.andi %201, %205 : vector<1x384xi1>
    %cst_133 = arith.constant 0.000000e+00 : f32
    %207 = vector.shape_cast %206 : vector<1x384xi1> to vector<1x384xi1>
    %208 = vector.broadcast %207 : vector<1x384xi1> to vector<8x384xi1>
    %209 = vector.broadcast %cst_133 : f32 to vector<8x384xf32>
    %210 = arith.select %208, %197, %209 : vector<8x384xi1>, vector<8x384xf32>
    %c48_i32_134 = arith.constant 48 : i32
    %211 = tpu.dynamic_rotate %210 by %c48_i32_134 dim 1 : vector<8x384xf32>, i32 -> vector<8x384xf32>
    %212 = vector.broadcast %19 : vector<8x1xf32> to vector<8x384xf32>
    %213 = arith.mulf %212, %211 : vector<8x384xf32>
    %214 = arith.addf %196, %213 : vector<8x384xf32>
    %c32_i32_135 = arith.constant 32 : i32
    %215 = tpu.dynamic_rotate %210 by %c32_i32_135 dim 1 : vector<8x384xf32>, i32 -> vector<8x384xf32>
    %216 = vector.broadcast %33 : vector<8x1xf32> to vector<8x384xf32>
    %217 = arith.mulf %216, %215 : vector<8x384xf32>
    %218 = arith.addf %214, %217 : vector<8x384xf32>
    %c16_i32_136 = arith.constant 16 : i32
    %219 = tpu.dynamic_rotate %210 by %c16_i32_136 dim 1 : vector<8x384xf32>, i32 -> vector<8x384xf32>
    %220 = vector.broadcast %47 : vector<8x1xf32> to vector<8x384xf32>
    %221 = arith.mulf %220, %219 : vector<8x384xf32>
    %222 = arith.addf %218, %221 : vector<8x384xf32>
    %223 = vector.broadcast %61 : vector<8x1xf32> to vector<8x384xf32>
    %224 = arith.mulf %223, %210 : vector<8x384xf32>
    %225 = arith.addf %222, %224 : vector<8x384xf32>
    %c368_i32_137 = arith.constant 368 : i32
    %226 = tpu.dynamic_rotate %210 by %c368_i32_137 dim 1 : vector<8x384xf32>, i32 -> vector<8x384xf32>
    %227 = vector.broadcast %75 : vector<8x1xf32> to vector<8x384xf32>
    %228 = arith.mulf %227, %226 : vector<8x384xf32>
    %229 = arith.addf %225, %228 : vector<8x384xf32>
    %c352_i32_138 = arith.constant 352 : i32
    %230 = tpu.dynamic_rotate %210 by %c352_i32_138 dim 1 : vector<8x384xf32>, i32 -> vector<8x384xf32>
    %231 = vector.broadcast %89 : vector<8x1xf32> to vector<8x384xf32>
    %232 = arith.mulf %231, %230 : vector<8x384xf32>
    %233 = arith.addf %229, %232 : vector<8x384xf32>
    %c336_i32_139 = arith.constant 336 : i32
    %234 = tpu.dynamic_rotate %210 by %c336_i32_139 dim 1 : vector<8x384xf32>, i32 -> vector<8x384xf32>
    %235 = vector.broadcast %103 : vector<8x1xf32> to vector<8x384xf32>
    %236 = arith.mulf %235, %234 : vector<8x384xf32>
    %237 = arith.addf %233, %236 : vector<8x384xf32>
    %c48_i32_140 = arith.constant 48 : i32
    %238 = tpu.dynamic_rotate %12 by %c48_i32_140 dim 1 : vector<8x384xf32>, i32 -> vector<8x384xf32>
    %239 = vector.broadcast %21 : vector<8x1xf32> to vector<8x384xf32>
    %240 = arith.mulf %239, %238 : vector<8x384xf32>
    %241 = arith.addf %237, %240 : vector<8x384xf32>
    %c32_i32_141 = arith.constant 32 : i32
    %242 = tpu.dynamic_rotate %12 by %c32_i32_141 dim 1 : vector<8x384xf32>, i32 -> vector<8x384xf32>
    %243 = vector.broadcast %35 : vector<8x1xf32> to vector<8x384xf32>
    %244 = arith.mulf %243, %242 : vector<8x384xf32>
    %245 = arith.addf %241, %244 : vector<8x384xf32>
    %c16_i32_142 = arith.constant 16 : i32
    %246 = tpu.dynamic_rotate %12 by %c16_i32_142 dim 1 : vector<8x384xf32>, i32 -> vector<8x384xf32>
    %247 = vector.broadcast %49 : vector<8x1xf32> to vector<8x384xf32>
    %248 = arith.mulf %247, %246 : vector<8x384xf32>
    %249 = arith.addf %245, %248 : vector<8x384xf32>
    %250 = vector.broadcast %63 : vector<8x1xf32> to vector<8x384xf32>
    %251 = arith.mulf %250, %12 : vector<8x384xf32>
    %252 = arith.addf %249, %251 : vector<8x384xf32>
    %c368_i32_143 = arith.constant 368 : i32
    %253 = tpu.dynamic_rotate %12 by %c368_i32_143 dim 1 : vector<8x384xf32>, i32 -> vector<8x384xf32>
    %254 = vector.broadcast %77 : vector<8x1xf32> to vector<8x384xf32>
    %255 = arith.mulf %254, %253 : vector<8x384xf32>
    %256 = arith.addf %252, %255 : vector<8x384xf32>
    %c352_i32_144 = arith.constant 352 : i32
    %257 = tpu.dynamic_rotate %12 by %c352_i32_144 dim 1 : vector<8x384xf32>, i32 -> vector<8x384xf32>
    %258 = vector.broadcast %91 : vector<8x1xf32> to vector<8x384xf32>
    %259 = arith.mulf %258, %257 : vector<8x384xf32>
    %260 = arith.addf %256, %259 : vector<8x384xf32>
    %c336_i32_145 = arith.constant 336 : i32
    %261 = tpu.dynamic_rotate %12 by %c336_i32_145 dim 1 : vector<8x384xf32>, i32 -> vector<8x384xf32>
    %262 = vector.broadcast %105 : vector<8x1xf32> to vector<8x384xf32>
    %263 = arith.mulf %262, %261 : vector<8x384xf32>
    %264 = arith.addf %260, %263 : vector<8x384xf32>
    %c383_i32 = arith.constant 383 : i32
    %265 = tpu.dynamic_rotate %12 by %c383_i32 dim 1 : vector<8x384xf32>, i32 -> vector<8x384xf32>
    %c1_i32_146 = arith.constant 1 : i32
    %266 = vector.broadcast %c1_i32_146 : i32 to vector<1x384xi32>
    %267 = arith.addi %13, %266 : vector<1x384xi32>
    %c0_i32_147 = arith.constant 0 : i32
    %268 = vector.broadcast %c0_i32_147 : i32 to vector<1x384xi32>
    %269 = arith.cmpi sge, %267, %268 : vector<1x384xi32>
    %c1_i32_148 = arith.constant 1 : i32
    %270 = vector.broadcast %c1_i32_148 : i32 to vector<1x384xi32>
    %271 = arith.addi %13, %270 : vector<1x384xi32>
    %c16_i32_149 = arith.constant 16 : i32
    %272 = vector.broadcast %c16_i32_149 : i32 to vector<1x384xi32>
    %273 = arith.cmpi slt, %271, %272 : vector<1x384xi32>
    %274 = arith.andi %269, %273 : vector<1x384xi1>
    %cst_150 = arith.constant 0.000000e+00 : f32
    %275 = vector.shape_cast %274 : vector<1x384xi1> to vector<1x384xi1>
    %276 = vector.broadcast %275 : vector<1x384xi1> to vector<8x384xi1>
    %277 = vector.broadcast %cst_150 : f32 to vector<8x384xf32>
    %278 = arith.select %276, %265, %277 : vector<8x384xi1>, vector<8x384xf32>
    %c48_i32_151 = arith.constant 48 : i32
    %279 = tpu.dynamic_rotate %278 by %c48_i32_151 dim 1 : vector<8x384xf32>, i32 -> vector<8x384xf32>
    %280 = vector.broadcast %23 : vector<8x1xf32> to vector<8x384xf32>
    %281 = arith.mulf %280, %279 : vector<8x384xf32>
    %282 = arith.addf %264, %281 : vector<8x384xf32>
    %c32_i32_152 = arith.constant 32 : i32
    %283 = tpu.dynamic_rotate %278 by %c32_i32_152 dim 1 : vector<8x384xf32>, i32 -> vector<8x384xf32>
    %284 = vector.broadcast %37 : vector<8x1xf32> to vector<8x384xf32>
    %285 = arith.mulf %284, %283 : vector<8x384xf32>
    %286 = arith.addf %282, %285 : vector<8x384xf32>
    %c16_i32_153 = arith.constant 16 : i32
    %287 = tpu.dynamic_rotate %278 by %c16_i32_153 dim 1 : vector<8x384xf32>, i32 -> vector<8x384xf32>
    %288 = vector.broadcast %51 : vector<8x1xf32> to vector<8x384xf32>
    %289 = arith.mulf %288, %287 : vector<8x384xf32>
    %290 = arith.addf %286, %289 : vector<8x384xf32>
    %291 = vector.broadcast %65 : vector<8x1xf32> to vector<8x384xf32>
    %292 = arith.mulf %291, %278 : vector<8x384xf32>
    %293 = arith.addf %290, %292 : vector<8x384xf32>
    %c368_i32_154 = arith.constant 368 : i32
    %294 = tpu.dynamic_rotate %278 by %c368_i32_154 dim 1 : vector<8x384xf32>, i32 -> vector<8x384xf32>
    %295 = vector.broadcast %79 : vector<8x1xf32> to vector<8x384xf32>
    %296 = arith.mulf %295, %294 : vector<8x384xf32>
    %297 = arith.addf %293, %296 : vector<8x384xf32>
    %c352_i32_155 = arith.constant 352 : i32
    %298 = tpu.dynamic_rotate %278 by %c352_i32_155 dim 1 : vector<8x384xf32>, i32 -> vector<8x384xf32>
    %299 = vector.broadcast %93 : vector<8x1xf32> to vector<8x384xf32>
    %300 = arith.mulf %299, %298 : vector<8x384xf32>
    %301 = arith.addf %297, %300 : vector<8x384xf32>
    %c336_i32_156 = arith.constant 336 : i32
    %302 = tpu.dynamic_rotate %278 by %c336_i32_156 dim 1 : vector<8x384xf32>, i32 -> vector<8x384xf32>
    %303 = vector.broadcast %107 : vector<8x1xf32> to vector<8x384xf32>
    %304 = arith.mulf %303, %302 : vector<8x384xf32>
    %305 = arith.addf %301, %304 : vector<8x384xf32>
    %c382_i32 = arith.constant 382 : i32
    %306 = tpu.dynamic_rotate %12 by %c382_i32 dim 1 : vector<8x384xf32>, i32 -> vector<8x384xf32>
    %c2_i32_157 = arith.constant 2 : i32
    %307 = vector.broadcast %c2_i32_157 : i32 to vector<1x384xi32>
    %308 = arith.addi %13, %307 : vector<1x384xi32>
    %c0_i32_158 = arith.constant 0 : i32
    %309 = vector.broadcast %c0_i32_158 : i32 to vector<1x384xi32>
    %310 = arith.cmpi sge, %308, %309 : vector<1x384xi32>
    %c2_i32_159 = arith.constant 2 : i32
    %311 = vector.broadcast %c2_i32_159 : i32 to vector<1x384xi32>
    %312 = arith.addi %13, %311 : vector<1x384xi32>
    %c16_i32_160 = arith.constant 16 : i32
    %313 = vector.broadcast %c16_i32_160 : i32 to vector<1x384xi32>
    %314 = arith.cmpi slt, %312, %313 : vector<1x384xi32>
    %315 = arith.andi %310, %314 : vector<1x384xi1>
    %cst_161 = arith.constant 0.000000e+00 : f32
    %316 = vector.shape_cast %315 : vector<1x384xi1> to vector<1x384xi1>
    %317 = vector.broadcast %316 : vector<1x384xi1> to vector<8x384xi1>
    %318 = vector.broadcast %cst_161 : f32 to vector<8x384xf32>
    %319 = arith.select %317, %306, %318 : vector<8x384xi1>, vector<8x384xf32>
    %c48_i32_162 = arith.constant 48 : i32
    %320 = tpu.dynamic_rotate %319 by %c48_i32_162 dim 1 : vector<8x384xf32>, i32 -> vector<8x384xf32>
    %321 = vector.broadcast %25 : vector<8x1xf32> to vector<8x384xf32>
    %322 = arith.mulf %321, %320 : vector<8x384xf32>
    %323 = arith.addf %305, %322 : vector<8x384xf32>
    %c32_i32_163 = arith.constant 32 : i32
    %324 = tpu.dynamic_rotate %319 by %c32_i32_163 dim 1 : vector<8x384xf32>, i32 -> vector<8x384xf32>
    %325 = vector.broadcast %39 : vector<8x1xf32> to vector<8x384xf32>
    %326 = arith.mulf %325, %324 : vector<8x384xf32>
    %327 = arith.addf %323, %326 : vector<8x384xf32>
    %c16_i32_164 = arith.constant 16 : i32
    %328 = tpu.dynamic_rotate %319 by %c16_i32_164 dim 1 : vector<8x384xf32>, i32 -> vector<8x384xf32>
    %329 = vector.broadcast %53 : vector<8x1xf32> to vector<8x384xf32>
    %330 = arith.mulf %329, %328 : vector<8x384xf32>
    %331 = arith.addf %327, %330 : vector<8x384xf32>
    %332 = vector.broadcast %67 : vector<8x1xf32> to vector<8x384xf32>
    %333 = arith.mulf %332, %319 : vector<8x384xf32>
    %334 = arith.addf %331, %333 : vector<8x384xf32>
    %c368_i32_165 = arith.constant 368 : i32
    %335 = tpu.dynamic_rotate %319 by %c368_i32_165 dim 1 : vector<8x384xf32>, i32 -> vector<8x384xf32>
    %336 = vector.broadcast %81 : vector<8x1xf32> to vector<8x384xf32>
    %337 = arith.mulf %336, %335 : vector<8x384xf32>
    %338 = arith.addf %334, %337 : vector<8x384xf32>
    %c352_i32_166 = arith.constant 352 : i32
    %339 = tpu.dynamic_rotate %319 by %c352_i32_166 dim 1 : vector<8x384xf32>, i32 -> vector<8x384xf32>
    %340 = vector.broadcast %95 : vector<8x1xf32> to vector<8x384xf32>
    %341 = arith.mulf %340, %339 : vector<8x384xf32>
    %342 = arith.addf %338, %341 : vector<8x384xf32>
    %c336_i32_167 = arith.constant 336 : i32
    %343 = tpu.dynamic_rotate %319 by %c336_i32_167 dim 1 : vector<8x384xf32>, i32 -> vector<8x384xf32>
    %344 = vector.broadcast %109 : vector<8x1xf32> to vector<8x384xf32>
    %345 = arith.mulf %344, %343 : vector<8x384xf32>
    %346 = arith.addf %342, %345 : vector<8x384xf32>
    %c381_i32 = arith.constant 381 : i32
    %347 = tpu.dynamic_rotate %12 by %c381_i32 dim 1 : vector<8x384xf32>, i32 -> vector<8x384xf32>
    %c3_i32_168 = arith.constant 3 : i32
    %348 = vector.broadcast %c3_i32_168 : i32 to vector<1x384xi32>
    %349 = arith.addi %13, %348 : vector<1x384xi32>
    %c0_i32_169 = arith.constant 0 : i32
    %350 = vector.broadcast %c0_i32_169 : i32 to vector<1x384xi32>
    %351 = arith.cmpi sge, %349, %350 : vector<1x384xi32>
    %c3_i32_170 = arith.constant 3 : i32
    %352 = vector.broadcast %c3_i32_170 : i32 to vector<1x384xi32>
    %353 = arith.addi %13, %352 : vector<1x384xi32>
    %c16_i32_171 = arith.constant 16 : i32
    %354 = vector.broadcast %c16_i32_171 : i32 to vector<1x384xi32>
    %355 = arith.cmpi slt, %353, %354 : vector<1x384xi32>
    %356 = arith.andi %351, %355 : vector<1x384xi1>
    %cst_172 = arith.constant 0.000000e+00 : f32
    %357 = vector.shape_cast %356 : vector<1x384xi1> to vector<1x384xi1>
    %358 = vector.broadcast %357 : vector<1x384xi1> to vector<8x384xi1>
    %359 = vector.broadcast %cst_172 : f32 to vector<8x384xf32>
    %360 = arith.select %358, %347, %359 : vector<8x384xi1>, vector<8x384xf32>
    %c48_i32_173 = arith.constant 48 : i32
    %361 = tpu.dynamic_rotate %360 by %c48_i32_173 dim 1 : vector<8x384xf32>, i32 -> vector<8x384xf32>
    %362 = vector.broadcast %27 : vector<8x1xf32> to vector<8x384xf32>
    %363 = arith.mulf %362, %361 : vector<8x384xf32>
    %364 = arith.addf %346, %363 : vector<8x384xf32>
    %c32_i32_174 = arith.constant 32 : i32
    %365 = tpu.dynamic_rotate %360 by %c32_i32_174 dim 1 : vector<8x384xf32>, i32 -> vector<8x384xf32>
    %366 = vector.broadcast %41 : vector<8x1xf32> to vector<8x384xf32>
    %367 = arith.mulf %366, %365 : vector<8x384xf32>
    %368 = arith.addf %364, %367 : vector<8x384xf32>
    %c16_i32_175 = arith.constant 16 : i32
    %369 = tpu.dynamic_rotate %360 by %c16_i32_175 dim 1 : vector<8x384xf32>, i32 -> vector<8x384xf32>
    %370 = vector.broadcast %55 : vector<8x1xf32> to vector<8x384xf32>
    %371 = arith.mulf %370, %369 : vector<8x384xf32>
    %372 = arith.addf %368, %371 : vector<8x384xf32>
    %373 = vector.broadcast %69 : vector<8x1xf32> to vector<8x384xf32>
    %374 = arith.mulf %373, %360 : vector<8x384xf32>
    %375 = arith.addf %372, %374 : vector<8x384xf32>
    %c368_i32_176 = arith.constant 368 : i32
    %376 = tpu.dynamic_rotate %360 by %c368_i32_176 dim 1 : vector<8x384xf32>, i32 -> vector<8x384xf32>
    %377 = vector.broadcast %83 : vector<8x1xf32> to vector<8x384xf32>
    %378 = arith.mulf %377, %376 : vector<8x384xf32>
    %379 = arith.addf %375, %378 : vector<8x384xf32>
    %c352_i32_177 = arith.constant 352 : i32
    %380 = tpu.dynamic_rotate %360 by %c352_i32_177 dim 1 : vector<8x384xf32>, i32 -> vector<8x384xf32>
    %381 = vector.broadcast %97 : vector<8x1xf32> to vector<8x384xf32>
    %382 = arith.mulf %381, %380 : vector<8x384xf32>
    %383 = arith.addf %379, %382 : vector<8x384xf32>
    %c336_i32_178 = arith.constant 336 : i32
    %384 = tpu.dynamic_rotate %360 by %c336_i32_178 dim 1 : vector<8x384xf32>, i32 -> vector<8x384xf32>
    %385 = vector.broadcast %111 : vector<8x1xf32> to vector<8x384xf32>
    %386 = arith.mulf %385, %384 : vector<8x384xf32>
    %387 = arith.addf %383, %386 : vector<8x384xf32>
    %388 = vector.extract_strided_slice %387 {offsets = [0, 0], sizes = [8, 256], strides = [1, 1]} : vector<8x384xf32> to vector<8x256xf32>
    %cst_179 = arith.constant 0.000000e+00 : f32
    %389 = vector.broadcast %cst_179 : f32 to vector<8x256xf32>
    %390 = arith.subf %389, %388 : vector<8x256xf32>
    %391 = math.exp %390 : vector<8x256xf32>
    %cst_180 = arith.constant 1.000000e+00 : f32
    %392 = vector.broadcast %cst_180 : f32 to vector<8x256xf32>
    %393 = arith.addf %392, %391 : vector<8x256xf32>
    %394 = tpu.reciprocal %393 {approx = true} : vector<8x256xf32> -> vector<8x256xf32>
    %395 = arith.mulf %1, %394 : vector<8x256xf32>
    %c0_181 = arith.constant 0 : index
    %c0_182 = arith.constant 0 : index
    %c0_183 = arith.constant 0 : index
    %396 = vector.load %arg7[%c0_181, %c0_182, %c0_183] : memref<1x8x256xf32, #tpu.memory_space<vmem>>, vector<1x8x256xf32>
    %397 = vector.shape_cast %396 : vector<1x8x256xf32> to vector<8x256xf32>
    %398 = vector.shape_cast %395 : vector<8x256xf32> to vector<1x8x256xf32>
    tpu.vector_store %arg7[%c0_181, %c0_182, %c0_183], %398 {strides = array<i32>} : memref<1x8x256xf32, #tpu.memory_space<vmem>>, vector<1x8x256xf32>,
    return
  }
  func.func @transform_0(%arg0: i32) -> (i32, i32) {
    %c0_i32 = arith.constant 0 : i32
    %c0_i32_0 = arith.constant 0 : i32
    %c0_i32_1 = arith.constant 0 : i32
    return %c0_i32, %c0_i32_0 : i32, i32
  }
  func.func @transform_1(%arg0: i32) -> (i32, i32) {
    %c0_i32 = arith.constant 0 : i32
    %c0_i32_0 = arith.constant 0 : i32
    %c0_i32_1 = arith.constant 0 : i32
    return %c0_i32, %c0_i32_0 : i32, i32
  }
  func.func @transform_2(%arg0: i32) -> (i32, i32, i32) {
    %c0_i32 = arith.constant 0 : i32
    %c0_i32_0 = arith.constant 0 : i32
    %c0_i32_1 = arith.constant 0 : i32
    %c0_i32_2 = arith.constant 0 : i32
    return %c0_i32, %c0_i32_0, %c0_i32_1 : i32, i32, i32
  }
  func.func @transform_3(%arg0: i32) -> (i32, i32) {
    %c0_i32 = arith.constant 0 : i32
    %c0_i32_0 = arith.constant 0 : i32
    %c0_i32_1 = arith.constant 0 : i32
    return %c0_i32, %c0_i32_0 : i32, i32
  }
  func.func @transform_4(%arg0: i32) -> (i32, i32) {
    %c0_i32 = arith.constant 0 : i32
    %c0_i32_0 = arith.constant 0 : i32
    %c0_i32_1 = arith.constant 0 : i32
    return %c0_i32, %c0_i32_0 : i32, i32
  }
  func.func @transform_5(%arg0: i32) -> (i32, i32, i32) {
    %c0_i32 = arith.constant 0 : i32
    %c0_i32_0 = arith.constant 0 : i32
    %c0_i32_1 = arith.constant 0 : i32
    return %arg0, %c0_i32, %c0_i32_0 : i32, i32, i32
  }
  func.func @transform_6(%arg0: i32) -> (i32, i32, i32) {
    %c0_i32 = arith.constant 0 : i32
    %c0_i32_0 = arith.constant 0 : i32
    %c0_i32_1 = arith.constant 0 : i32
    return %arg0, %c0_i32, %c0_i32_0 : i32, i32, i32
  }
}

</mosaic_0001>

<bundles_post_ra>
// kernel: tpu_custom_call.1
= control target key start
LH: loop header
LB: loop body
LE: loop exit
PB: predicated region body
PF: predicated region fallthrough
CT: control target
= control target key end

     0   :  { %11 = vsyncpa [#allocation4], 0  ;;  %s3116_s0 = inlined_call_operand.vmem [shape: f32[8,8], index: 0, kind: input, shape index: {}]   ;;  %s3117_s1 = inlined_call_operand.vmem [shape: f32[8,1], index: 1, kind: input, shape index: {}]   ;;  %s3118_s2 = inlined_call_operand.vmem [shape: f32[49,8,1], index: 2, kind: input, shape index: {}]   ;;  %s3119_s3 = inlined_call_operand.vmem [shape: f32[8,1], index: 3, kind: input, shape index: {}]   ;;  %s3120_s4 = inlined_call_operand.vmem [shape: s32[1,384], index: 4, kind: input, shape index: {}]   ;;  %s3121_s5 = inlined_call_operand.vmem [shape: f32[2,8,256], index: 5, kind: input, shape index: {}]   ;;  %s3122_s6 = inlined_call_operand.hbm [shape: f32[2,8,256], index: 6, kind: output, shape index: {}]  }
   0x1   :  { %13 = vsyncpa [#allocation4 + $0x1], 0  ;;  %s1759_s21 = smov 0   ;;  %s1761_s22 = smov 0  }
   0x2   :  { %s1763_s23 = smov 0   ;;  %s1765_s24 = smov 0  }
   0x3 LB: > { %s1780_s25 = sadd.s32 4294967295, %s1707_s24   ;;  %s1519_s26 = sadd.s32 4294967294, %s1707_s24   ;;  %s1707_s24 = sphi %s1765_s24, %s3303_s24   ;;  %s1703_s23 = sphi %s1763_s23, %s3302_s23   ;;  %s1699_s22 = sphi %s1761_s22, %s3301_s22   ;;  %s1695_s21 = sphi %s1759_s21, %s3300_s21  }
   0x4   : > { %s1784_s27 = sadd.s32 1, %s1707_s24   ;;  %s157_s28 = sadd.s32 1, %s1703_s23 }
   0x5   : > { %s154_s29 = ssub.s32 %s1707_s24, %s1784_s27  ;;  %p167_p0 = scmp.ne.s32.totalorder %s1703_s23, %s1699_s22 }
   0x6   : > { %p155_p1 = scmp.eq.s32.totalorder %s154_s29, 0  ;;  %p168_p2 = scmp.eq.s32.totalorder %s1780_s25, 1 }
   0x7   : > { %p173_p3 = scmp.ne.s32.totalorder %s1699_s22, %s1695_s21  ;;  %p174_p4 = scmp.eq.s32.totalorder %s1519_s26, 1 }
   0x8   : > { %s1795_s30 = scalar_select %p155_p1, %s1703_s23, %s157_s28  }
   0x9   : > { %p1797_p5 = por %p168_p2, %p167_p0  ;;  %p1801_p6 = por %p174_p4, %p173_p3 }
   0xa   : > { %p1522_p7 = scmp.ge.s32.totalorder %s1707_s24, 1  ;;  %p215_p8 = scmp.lt.s32.totalorder %s1707_s24, 3 }
   0xc   : > { %p216_p9 = pnand %p1522_p7, %p215_p8 }
   0xe   : > { %219 = sbr.rel (%p216_p9) target bundleno = 753 (0x2f1), region = 44 }
  0x13   : > { %v1547_v0 = vld [vmem:[%s3118_s2 + $0xa8] sm:$0xff]  ;;  %v253_v1 = vld [vmem:[%s3117_s1] sm:$0xff]  ;;  %p245_p10 = scmp.lt.s32.totalorder %s1780_s25, 1  ;;  %v3140_v2 = vmov 0   ;;  %v1710_v5 = vmov 0.0   ;;  %vm259_vm0 = vcmask 64512  }
  0x14   : > { %1636 = vset.pattern.permute.xlu1 %v3140_v2  ;;  %1635 = vset.pattern.permute.xlu0 %v3140_v2  ;;  %v1554_v3 = vld [vmem:[%s3118_s2 + $0xe0] sm:$0xff]  ;;  %v1561_v9 = vld [vmem:[%s3118_s2 + $0x118] sm:$0xff]  ;;  %s1711_s11 = smov 3   ;;  %v1568_v10 = vld [vmem:[%s3118_s2 + $0x150] sm:$0xff]  ;;  %s1713_s16 = smov 1  }
  0x15   : > { %539 = vperm.xlu1 %1636, %v1547_v0   ;;  %256 = vperm.xlu0 %1635, %v253_v1   ;;  %s246_s13 = scalar_select %p245_p10, %s1780_s25, 1  ;;  %v442_v4 = vld [vmem:[%s3119_s3] sm:$0xff]  ;;  %v1548_v12 = vld [vmem:[%s3118_s2 + $0xb0] sm:$0xff]  ;;  %v1533_v13 = vld [vmem:[%s3118_s2 + $0x38] sm:$0xff] }
  0x16   : > { %327 = vmatprep.mubr.f32.mxu0 %v1710_v5  ;;  %v252_v8 = vld [vmem:[%s3116_s0] sm:$0xff]  ;;  %v1555_v14 = vld [vmem:[%s3118_s2 + $0xe8] sm:$0xff]  ;;  %v1540_v15 = vld [vmem:[%s3118_s2 + $0x70] sm:$0xff]  ;;  %s3133_s20 = smov 48   ;;  %s1715_s28 = smov 112  }
  0x17   : > { %s1580_s18 = sshll.u32 %s246_s13, 4  ;;  %v345_v11 = vld [vmem:[%s3118_s2] sm:$0xff]  ;;  %s1712_s13 = smov 2   ;;  %v1569_v17 = vld [vmem:[%s3118_s2 + $0x158] sm:$0xff]  ;;  %v1527_v18 = vld [vmem:[%s3118_s2 + $0x8] sm:$0xff] }
  0x18   : > { %s1827_s26 = scalar_lea.vmem %s3121_s5, %s1580_s18  ;;  %v1562_v16 = vld [vmem:[%s3118_s2 + $0x120] sm:$0xff]  ;;  %v1549_v19 = vld [vmem:[%s3118_s2 + $0xb8] sm:$0xff]  ;;  %v1556_v21 = vld [vmem:[%s3118_s2 + $0xf0] sm:$0xff]  ;;  %s3123_s29 = smov 32  }
  0x19   : > { %557 = vperm.xlu1 %1636, %v1554_v3   ;;  %445 = vperm.xlu0 %1635, %v442_v4   ;;  %v251_v6 = vld [vmem:[%s1827_s26 + $0x8] sm:$0xff]  ;;  %v250_v7 = vld [vmem:[%s1827_s26] sm:$0xff]  ;;  %v1541_v22 = vld [vmem:[%s3118_s2 + $0x78] sm:$0xff]  ;;  %s3129_s9 = smov 96   ;;  %s3125_s10 = smov 16  }
  0x1a   : > { %293 = vmatprep.subr.mxu0 %v251_v6  ;;  %v1534_v20 = vld [vmem:[%s3118_s2 + $0x40] sm:$0xff]  ;;  %v1563_v23 = vld [vmem:[%s3118_s2 + $0x128] sm:$0xff]  ;;  %v1528_v25 = vld [vmem:[%s3118_s2 + $0x10] sm:$0xff]  ;;  %s3127_s15 = smov 80   ;;  %s3131_s19 = smov 127  }
  0x1b   : > { %294 = vmatpush1.msra.mxu0 %v250_v7  ;;  %v1570_v24 = vld [vmem:[%s3118_s2 + $0x160] sm:$0xff]  ;;  %v1529_v26 = vld [vmem:[%s3118_s2 + $0x18] sm:$0xff]  ;;  %v1535_v27 = vld [vmem:[%s3118_s2 + $0x48] sm:$0xff]  ;;  %s3180_s17 = smov 32   ;;  %s3181_s18 = smov 80  }
  0x1c   : > { %1526 = vmatmul.mubr.msk.f32.vlgmr.msra.gmra.mxu0 %vm259_vm0, %v252_v8  ;;  %v1536_v28 = vld [vmem:[%s3118_s2 + $0x50] sm:$0xff]  ;;  %v1542_v29 = vld [vmem:[%s3118_s2 + $0x80] sm:$0xff]  ;;  %v1543_v30 = vld [vmem:[%s3118_s2 + $0x88] sm:$0xff]  ;;  %s3184_s12 = smov 127  }
  0x1d   : > { %575 = vperm.xlu1 %1636, %v1561_v9   ;;  %452 = vrot.lane.b32.xlu0 %v1710_v5, %s1711_s11  ;;  %v1550_v31 = vld [vmem:[%s3118_s2 + $0xc0] sm:$0xff]  ;;  %v1557_v32 = vld [vmem:[%s3118_s2 + $0xf8] sm:$0xff]  ;;  %v1564_v34 = vld [vmem:[%s3118_s2 + $0x130] sm:$0xff] }
  0x1e   : > { %v1530_v33 = vld [vmem:[%s3118_s2 + $0x20] sm:$0xff]  ;;  %v1537_v35 = vld [vmem:[%s3118_s2 + $0x58] sm:$0xff]  ;;  %v1571_v36 = vld [vmem:[%s3118_s2 + $0x168] sm:$0xff] }
  0x1f   : > { %v1544_v37 = vld [vmem:[%s3118_s2 + $0x90] sm:$0xff]  ;;  %v1531_v38 = vld [vmem:[%s3118_s2 + $0x28] sm:$0xff]  ;;  %v1566_v39 = vld [vmem:[%s3118_s2 + $0x140] sm:$0xff] }
  0x20   : > { %v1551_v40 = vld [vmem:[%s3118_s2 + $0xc8] sm:$0xff]  ;;  %v1573_v41 = vld [vmem:[%s3118_s2 + $0x178] sm:$0xff]  ;;  %v1558_v42 = vld [vmem:[%s3118_s2 + $0x100] sm:$0xff] }
  0x21   : > { %593 = vperm.xlu1 %1636, %v1568_v10   ;;  %494 = vperm.xlu0 %1635, %v345_v11   ;;  %v1565_v43 = vld [vmem:[%s3118_s2 + $0x138] sm:$0xff]  ;;  %v1572_v44 = vld [vmem:[%s3118_s2 + $0x170] sm:$0xff]  ;;  %v1538_v45 = vld [vmem:[%s3118_s2 + $0x60] sm:$0xff]  ;;  %v3139_v11 = vlaneseq }
  0x22   : > { %v1545_v46 = vld [vmem:[%s3118_s2 + $0x98] sm:$0xff]  ;;  %v1552_v47 = vld [vmem:[%s3118_s2 + $0xd0] sm:$0xff]  ;;  %v1559_v48 = vld [vmem:[%s3118_s2 + $0x108] sm:$0xff] }
  0x23   : > { %v2021_v7 = vld [vmem:[%s3120_s4] sm:$0x7] }
  0x24   : > { %v754_v10 = vadd.s32 4294967295, %v2021_v7 }
  0x25   : > { %686 = vperm.xlu1 %1636, %v1548_v12   ;;  %512 = vperm.xlu0 %1635, %v1533_v13  }
  0x26   : > { %vm755_vm1 = vcmp.ge.s32.totalorder %v754_v10, 0  ;;  %vm756_vm2 = vcmp.lt.s32.totalorder %v754_v10, 16 }
  0x27   : > { %vm757_vm3 = vmand %vm755_vm1, %vm756_vm2 }
  0x29   : > { %703 = vperm.xlu1 %1636, %v1555_v14   ;;  %530 = vperm.xlu0 %1635, %v1540_v15   ;;  %v2041_v14 = vshrl.u32 %v3139_v11, 7 }
  0x2d   : > { %720 = vperm.xlu1 %1636, %v1562_v16   ;;  %604 = vrot.lane.b32.xlu0 %v1710_v5, %s1712_s13  ;;  %v2044_v16 = vsub.s32 2, %v2041_v14 }
  0x31   : > { %737 = vperm.xlu1 %1636, %v1569_v17   ;;  %643 = vperm.xlu0 %1635, %v1527_v18   ;;  %v2051_v17 = vsel %vm757_vm3, 1, %v3140_v2 }
  0x35   : > { %830 = vperm.xlu1 %1636, %v1549_v19   ;;  %660 = vperm.xlu0 %1635, %v1534_v20  }
  0x39   : > { %847 = vperm.xlu1 %1636, %v1556_v21   ;;  %677 = vperm.xlu0 %1635, %v1541_v22   ;;  %v1009_v22 = vadd.s32 1, %v2021_v7 }
  0x3b   : > { %vm1010_vm4 = vcmp.ge.s32.totalorder %v1009_v22, 0  ;;  %vm1011_vm5 = vcmp.lt.s32.totalorder %v1009_v22, 16 }
  0x3c   : > { %vm1012_vm6 = vmand %vm1010_vm4, %vm1011_vm5 }
  0x3d   : > { %864 = vperm.xlu1 %1636, %v1563_v23   ;;  %748 = vrot.lane.b32.xlu0 %v1710_v5, %s1713_s16 }
  0x41   : > { %881 = vperm.xlu1 %1636, %v1570_v24   ;;  %787 = vperm.xlu0 %1635, %v1528_v25   ;;  %v1153_v24 = vadd.s32 2, %v2021_v7 }
  0x43   : > { %vm1154_vm7 = vcmp.ge.s32.totalorder %v1153_v24, 0  ;;  %vm1155_vm8 = vcmp.lt.s32.totalorder %v1153_v24, 16  ;;  %v460_v24 = vadd.s32 4294967293, %v2021_v7 }
  0x44   : > { %vm1156_vm9 = vmand %vm1154_vm7, %vm1155_vm8 }
  0x45   : > { %898 = vperm.xlu1 %1636, %v1529_v26   ;;  %804 = vperm.xlu0 %1635, %v1535_v27   ;;  %v2076_v27 = vsub.s32 1, %v2041_v14  ;;  %vm461_vm10 = vcmp.ge.s32.totalorder %v460_v24, 0  ;;  %vm462_vm11 = vcmp.lt.s32.totalorder %v460_v24, 16 }
  0x46   : > { %vm463_vm12 = vmand %vm461_vm10, %vm462_vm11 }
  0x49   : > { %915 = vperm.xlu1 %1636, %v1536_v28   ;;  %821 = vperm.xlu0 %1635, %v1542_v29   ;;  %v2083_v28 = vsel %vm1012_vm6, 1, %v3140_v2 }
  0x4d   : > { %932 = vperm.xlu1 %1636, %v1543_v30   ;;  %892 = vrot.lane.b32.xlu0 %v1710_v5, %s3133_s20  ;;  %s3178_s20 = smov 48  }
  0x51   : > { %952 = vrot.lane.b32.xlu1 %v1710_v5, %s1715_s28  ;;  %909 = vrot.lane.b32.xlu0 %v1710_v5, %s3123_s29  ;;  %s3137_s29 = smov 126  }
  0x55   : > { %969 = vrot.lane.b32.xlu1 %v1710_v5, %s3129_s9  ;;  %926 = vrot.lane.b32.xlu0 %v1710_v5, %s3125_s10  ;;  %s3135_s9 = smov 125   ;;  %s3183_s10 = smov 16  }
  0x59   : > { %986 = vrot.lane.b32.xlu1 %v1710_v5, %s3127_s15  ;;  %941 = vperm.xlu0 %1635, %v1550_v31  }
  0x5d   : > { %1003 = vrot.lane.b32.xlu1 %v1710_v5, %s3131_s19  ;;  %958 = vperm.xlu0 %1635, %v1557_v32   ;;  %s3179_s19 = smov 96   ;;  %v2096_v32 = vsel %vm1156_vm9, 1, %v3140_v2  ;;  %v2170_v2 = vsub.s32 0, %v2041_v14 }
  0x61   : > { %1042 = vperm.xlu1 %1636, %v1530_v33   ;;  %975 = vperm.xlu0 %1635, %v1564_v34  }
  0x65   : > { %1059 = vperm.xlu1 %1636, %v1537_v35   ;;  %992 = vperm.xlu0 %1635, %v1571_v36  }
  0x69   : > { %1076 = vperm.xlu1 %1636, %v1544_v37   ;;  %1147 = vrot.lane.b32.xlu0 %v1710_v5, %s3137_s29  ;;  %s3187_s29 = smov 126  }
  0x6d   : > { %1186 = vperm.xlu1 %1636, %v1531_v38   ;;  %1291 = vrot.lane.b32.xlu0 %v1710_v5, %s3135_s9  ;;  %s3188_s9 = smov 125  }
  0x71   : > { %1263 = vperm.xlu1 %1636, %v1566_v39   ;;  %1085 = vperm.xlu0 %1635, %v1551_v40  }
  0x75   : > { %1280 = vperm.xlu1 %1636, %v1573_v41   ;;  %1102 = vperm.xlu0 %1635, %v1558_v42  }
  0x79   : > { %1119 = vperm.xlu0 %1635, %v1565_v43  }
  0x7d   : > { %1136 = vperm.xlu0 %1635, %v1572_v44  }
  0x81   : > { %1203 = vperm.xlu0 %1635, %v1538_v45  }
  0x85   : > { %1220 = vperm.xlu0 %1635, %v1545_v46  }
  0x89   : > { %1229 = vperm.xlu0 %1635, %v1552_v47  }
  0x8d   : > { %1246 = vperm.xlu0 %1635, %v1559_v48  }
  0x90   : > { %v257_v49 = vpop.permute.xlu0 %256  ;;  %v1988_v55 = vpop.permute.xlu1 %539 }
  0x94   : > { %v1978_v50 = vpop.permute.xlu0 %445  ;;  %v1992_v57 = vpop.permute.xlu1 %557 }
  0x98   : > { %v1980_v51 = vpop.permute.xlu0 %452  ;;  %v1996_v59 = vpop.permute.xlu1 %575 }
  0x9c   : > { %v1982_v52 = vpop.permute.xlu0 %494  ;;  %v2000_v61 = vpop.permute.xlu1 %593 }
  0xa0   : > { %v1984_v53 = vpop.permute.xlu0 %512  ;;  %v2004_v63 = vpop.permute.xlu1 %686 }
  0xa4   : > { %v1986_v54 = vpop.permute.xlu0 %530  ;;  %v2008_v3 = vpop.permute.xlu1 %703 }
  0xa8   : > { %v1990_v56 = vpop.permute.xlu0 %604  ;;  %v2023_v8 = vpop.permute.xlu1 %720 }
  0xac   : > { %v1994_v58 = vpop.permute.xlu0 %643  ;;  %v2032_v12 = vpop.permute.xlu1 %737 }
  0xb0   : > { %v1998_v60 = vpop.permute.xlu0 %660  ;;  %v2055_v19 = vpop.permute.xlu1 %830 }
  0xb4   : > { %v2002_v62 = vpop.permute.xlu0 %677  ;;  %v2067_v25 = vpop.permute.xlu1 %847 }
  0xb8   : > { %v2006_v0 = vpop.permute.xlu0 %748  ;;  %v2087_v30 = vpop.permute.xlu1 %864 }
  0xbc   : > { %v2010_v4 = vpop.permute.xlu0 %787  ;;  %v2100_v34 = vpop.permute.xlu1 %881 }
  0xbd   : > { %3190 = vst [vmem:[#allocation11_spill] sm:$0xff] %v2100_v34 }
  0xc0   : > { %v2025_v9 = vpop.permute.xlu0 %804  ;;  %v2112_v36 = vpop.permute.xlu1 %898 }
  0xc1   : > { %3192 = vst [vmem:[#allocation13_spill] sm:$0xff] %v2112_v36 }
  0xc4   : > { %v2034_v13 = vpop.permute.xlu0 %821  ;;  %v2120_v38 = vpop.permute.xlu1 %915 }
  0xc5   : > { %3194 = vst [vmem:[#allocation15_spill] sm:$0xff] %v2120_v38 }
  0xc8   : > { %v2057_v20 = vpop.permute.xlu0 %892  ;;  %v2128_v40 = vpop.permute.xlu1 %932 }
  0xc9   : > { %3182 = vst [vmem:[#allocation7_spill] sm:$0xff] %v2057_v20  ;;  %3196 = vst [vmem:[#allocation17_spill] sm:$0xff] %v2128_v40 }
  0xcc   : > { %v2069_v26 = vpop.permute.xlu0 %909  ;;  %v2132_v42 = vpop.permute.xlu1 %952 }
  0xcd   : > { %3186 = vst [vmem:[#allocation9_spill] sm:$0xff] %v2069_v26  ;;  %3198 = vst [vmem:[#allocation19_spill] sm:$0xff] %v2132_v42 }
  0xd0   : > { %v2089_v31 = vpop.permute.xlu0 %926  ;;  %v2136_v44 = vpop.permute.xlu1 %969 }
  0xd1   : > { %3189 = vst [vmem:[#allocation10_spill] sm:$0xff] %v2089_v31  ;;  %3199 = vst [vmem:[#allocation20_spill] sm:$0xff] %v2136_v44  ;;  %v762_v44 = vrot.slane %v2051_v17, %v2170_v2 }
  0xd3   : > { %vm771_vm5 = vcmp.eq.s32.totalorder %v762_v44, 1  ;;  %v3223_v44 = vrot.slane %v2051_v17, %v2044_v16 }
  0xd4   : > { %v2102_v35 = vpop.permute.xlu0 %941  ;;  %v2140_v46 = vpop.permute.xlu1 %986 }
  0xd5   : > { %3191 = vst [vmem:[#allocation12_spill] sm:$0xff] %v2102_v35  ;;  %3200 = vst [vmem:[#allocation21_spill] sm:$0xff] %v2140_v46  ;;  %vm773_vm7 = vcmp.eq.s32.totalorder %v3223_v44, 1 }
  0xd8   : > { %v2114_v37 = vpop.permute.xlu0 %958  ;;  %v2144_v48 = vpop.permute.xlu1 %1003 }
  0xd9   : > { %3193 = vst [vmem:[#allocation14_spill] sm:$0xff] %v2114_v37  ;;  %v766_v37 = vrot.slane %v2051_v17, %v2076_v27 }
  0xdb   : > { %vm772_vm6 = vcmp.eq.s32.totalorder %v766_v37, 1  ;;  %v1025_v37 = vrot.slane %v2083_v28, %v2044_v16 }
  0xdc   : > { %v329_v1 = vpop.f32.mrf.mxu0  ;;  %v2122_v39 = vpop.permute.xlu0 %975 }
  0xdd   : > { %v330_v5 = vadd.f32 %v329_v1, %v257_v49  ;;  %3195 = vst [vmem:[#allocation16_spill] sm:$0xff] %v2122_v39  ;;  %v2148_v1 = vpop.permute.xlu1 %1042  ;;  %vm1028_vm9 = vcmp.eq.s32.totalorder %v1025_v37, 1  ;;  %v1169_v37 = vrot.slane %v2096_v32, %v2044_v16 }
  0xde   : > { %v331_v15 = vpop.f32.mrf.mxu0  ;;  %3203 = vst [vmem:[#allocation24_spill] sm:$0xff] %v2148_v1 }
  0xdf   : > { %v2012_v6 = vmax.f32 %v330_v5, 0.0  ;;  %v332_v21 = vadd.f32 %v331_v15, %v257_v49 }
  0xe0   : > { %v2130_v41 = vpop.permute.xlu0 %992 }
  0xe1   : > { %3177 = vst [vmem:[#allocation6_spill] sm:$0xff] %v2012_v6  ;;  %600 = vrot.lane.b32.xlu0 %v2012_v6, %s1712_s13  ;;  %448 = vrot.lane.b32.xlu1 %v2012_v6, %s1711_s11  ;;  %v2064_v23 = vmax.f32 %v332_v21, 0.0  ;;  %3197 = vst [vmem:[#allocation18_spill] sm:$0xff] %v2130_v41  ;;  %v2152_v10 = vpop.permute.xlu1 %1059 }
  0xe2   : > { %3205 = vst [vmem:[#allocation26_spill] sm:$0xff] %v2152_v10 }
  0xe3   : > { %3185 = vst [vmem:[#allocation8_spill] sm:$0xff] %v2064_v23 }
  0xe4   : > { %v2134_v43 = vpop.permute.xlu0 %1147 }
  0xe5   : > { %744 = vrot.lane.b32.xlu0 %v2012_v6, %s1713_s16  ;;  %948 = vrot.lane.b32.xlu1 %v2012_v6, %s1715_s28  ;;  %v2156_v21 = vpop.permute.xlu1 %1076 }
  0xe6   : > { %3207 = vst [vmem:[#allocation28_spill] sm:$0xff] %v2156_v21 }
  0xe8   : > { %v2138_v45 = vpop.permute.xlu0 %1291 }
  0xe9   : > { %888 = vrot.lane.b32.xlu0 %v2012_v6, %s3178_s20  ;;  %965 = vrot.lane.b32.xlu1 %v2012_v6, %s3179_s19  ;;  %v2161_v33 = vpop.permute.xlu1 %1186 }
  0xea   : > { %3209 = vst [vmem:[#allocation30_spill] sm:$0xff] %v2161_v33  ;;  %v610_v33 = vadd.s32 4294967294, %v2021_v7 }
  0xec   : > { %v2142_v47 = vpop.permute.xlu0 %1085  ;;  %vm611_vm13 = vcmp.ge.s32.totalorder %v610_v33, 0  ;;  %vm612_vm14 = vcmp.lt.s32.totalorder %v610_v33, 16 }
  0xed   : > { %905 = vrot.lane.b32.xlu0 %v2012_v6, %s3180_s17  ;;  %982 = vrot.lane.b32.xlu1 %v2012_v6, %s3181_s18  ;;  %3201 = vst [vmem:[#allocation22_spill] sm:$0xff] %v2142_v47  ;;  %v2165_v18 = vpop.permute.xlu1 %1263  ;;  %vm613_vm1 = vmand %vm611_vm13, %vm612_vm14  ;;  %vm1172_vm13 = vcmp.eq.s32.totalorder %v1169_v37, 1 }
  0xee   : > { %3211 = vst [vmem:[#allocation32_spill] sm:$0xff] %v2165_v18 }
  0xf0   : > { %v2146_v49 = vpop.permute.xlu0 %1102 }
  0xf1   : > { %922 = vrot.lane.b32.xlu0 %v2012_v6, %s3183_s10  ;;  %999 = vrot.lane.b32.xlu1 %v2012_v6, %s3184_s12  ;;  %3202 = vst [vmem:[#allocation23_spill] sm:$0xff] %v2146_v49  ;;  %v2181_v24 = vpop.permute.xlu1 %1280 }
  0xf2   : > { %3215 = vst [vmem:[#allocation34_spill] sm:$0xff] %v2181_v24 }
  0xf4   : > { %v2150_v5 = vpop.permute.xlu0 %1119 }
  0xf5   : > { %1143 = vrot.lane.b32.xlu0 %v2012_v6, %s3187_s29  ;;  %450 = vrot.lane.b32.xlu1 %v2064_v23, %s1711_s11  ;;  %3204 = vst [vmem:[#allocation25_spill] sm:$0xff] %v2150_v5 }
  0xf8   : > { %v2154_v15 = vpop.permute.xlu0 %1136 }
  0xf9   : > { %1287 = vrot.lane.b32.xlu0 %v2012_v6, %s3188_s9  ;;  %602 = vrot.lane.b32.xlu1 %v2064_v23, %s1712_s13  ;;  %3206 = vst [vmem:[#allocation27_spill] sm:$0xff] %v2154_v15  ;;  %v3213_v15 = vmov 0  }
  0xfa   : > { %v2173_v5 = vsel %vm463_vm12, 1, %v3213_v15 }
  0xfc   : > { %v2158_v22 = vpop.permute.xlu0 %1203 }
  0xfd   : > { %950 = vrot.lane.b32.xlu0 %v2064_v23, %s1715_s28  ;;  %746 = vrot.lane.b32.xlu1 %v2064_v23, %s1713_s16  ;;  %3208 = vst [vmem:[#allocation29_spill] sm:$0xff] %v2158_v22  ;;  %v3214_v22 = vlaneseq }
  0xff   : > { %v2176_v49 = vand.u32 127, %v3214_v22 }
 0x100   : > { %v2163_v29 = vpop.permute.xlu0 %1220 }
 0x101   : > { %967 = vrot.lane.b32.xlu0 %v2064_v23, %s3179_s19  ;;  %890 = vrot.lane.b32.xlu1 %v2064_v23, %s3178_s20  ;;  %3210 = vst [vmem:[#allocation31_spill] sm:$0xff] %v2163_v29  ;;  %v468_v29 = vrot.slane %v2173_v5, %v2170_v2  ;;  %vm456_vm15 = vcmp.lt.s32.totalorder %v2176_v49, 3  ;;  %vm606_vm2 = vcmp.lt.s32.totalorder %v2176_v49, 2  ;;  %vm750_vm4 = vcmp.lt.s32.totalorder %v2176_v49, 1 }
 0x102   : > { %vm1005_vm8 = vcmp.lt.s32.totalorder %v2176_v49, 127  ;;  %vm1149_vm12 = vcmp.lt.s32.totalorder %v2176_v49, 126 }
 0x103   : > { %vm477_vm0 = vcmp.eq.s32.totalorder %v468_v29, 1  ;;  %v2201_v29 = vsel %vm613_vm1, 1, %v3213_v15 }
 0x104   : > { %v2167_v11 = vpop.permute.xlu0 %1229 }
 0x105   : > { %984 = vrot.lane.b32.xlu0 %v2064_v23, %s3181_s18  ;;  %907 = vrot.lane.b32.xlu1 %v2064_v23, %s3180_s17  ;;  %3212 = vst [vmem:[#allocation33_spill] sm:$0xff] %v2167_v11 }
 0x108   : > { %v2183_v47 = vpop.permute.xlu0 %1246 }
 0x109   : > { %1001 = vrot.lane.b32.xlu0 %v2064_v23, %s3184_s12  ;;  %924 = vrot.lane.b32.xlu1 %v2064_v23, %s3183_s10  ;;  %3216 = vst [vmem:[#allocation35_spill] sm:$0xff] %v2183_v47  ;;  %v618_v47 = vrot.slane %v2201_v29, %v2170_v2 }
 0x10b   : > { %vm627_vm3 = vcmp.eq.s32.totalorder %v618_v47, 1 }
 0x10d   : > { %1145 = vrot.lane.b32.xlu1 %v2064_v23, %s3187_s29 }
 0x111   : > { %1289 = vrot.lane.b32.xlu1 %v2064_v23, %s3188_s9 }
 0x153   : > { %v2186_v14 = vpop.permute.xlu0 %600  ;;  %v2188_v18 = vpop.permute.xlu1 %448 }
 0x154   : > { %v459_v22 = vsel %vm456_vm15, %v1980_v51, %v2188_v18  ;;  %v609_v10 = vsel %vm606_vm2, %v1990_v56, %v2186_v14 }
 0x155   : > { %v2194_v11 = vsel %vm477_vm0, %v459_v22, 0.0  ;;  %v2228_v46 = vsel %vm627_vm3, %v609_v10, 0.0 }
 0x156   : > { %546 = vrot.lane.b32.xlu0 %v2194_v11, %s1715_s28  ;;  %483 = vrot.lane.b32.xlu1 %v2194_v11, %s3178_s20 }
 0x157   : > { %v745_v33 = vpop.permute.xlu0 %744  ;;  %v2203_v24 = vpop.permute.xlu1 %948 }
 0x158   : > { %3217 = vst [vmem:[#allocation36_spill] sm:$0xff] %v2203_v24 }
 0x15a   : > { %564 = vrot.lane.b32.xlu0 %v2194_v11, %s3179_s19  ;;  %501 = vrot.lane.b32.xlu1 %v2194_v11, %s3180_s17 }
 0x15b   : > { %v2212_v22 = vpop.permute.xlu0 %888  ;;  %v2214_v21 = vpop.permute.xlu1 %965 }
 0x15c   : > { %3218 = vst [vmem:[#allocation37_spill] sm:$0xff] %v2212_v22  ;;  %3219 = vst [vmem:[#allocation38_spill] sm:$0xff] %v2214_v21  ;;  %v753_v21 = vsel %vm750_vm4, %v2006_v0, %v745_v33 }
 0x15d   : > { %v2258_v23 = vsel %vm771_vm5, %v753_v21, 0.0 }
 0x15e   : > { %582 = vrot.lane.b32.xlu0 %v2194_v11, %s3181_s18  ;;  %519 = vrot.lane.b32.xlu1 %v2194_v11, %s3183_s10 }
 0x15f   : > { %v2224_v1 = vpop.permute.xlu0 %905  ;;  %v2226_v41 = vpop.permute.xlu1 %982 }
 0x160   : > { %3220 = vst [vmem:[#allocation39_spill] sm:$0xff] %v2224_v1  ;;  %3221 = vst [vmem:[#allocation40_spill] sm:$0xff] %v2226_v41 }
 0x162   : > { %693 = vrot.lane.b32.xlu0 %v2228_v46, %s1715_s28  ;;  %633 = vrot.lane.b32.xlu1 %v2228_v46, %s3178_s20 }
 0x163   : > { %v2234_v47 = vpop.permute.xlu0 %922  ;;  %v1000_v39 = vpop.permute.xlu1 %999 }
 0x164   : > { %3222 = vst [vmem:[#allocation41_spill] sm:$0xff] %v2234_v47 }
 0x166   : > { %710 = vrot.lane.b32.xlu0 %v2228_v46, %s3179_s19  ;;  %650 = vrot.lane.b32.xlu1 %v2228_v46, %s3180_s17 }
 0x167   : > { %v1144_v10 = vpop.permute.xlu0 %1143  ;;  %v2243_v41 = vpop.permute.xlu1 %450 }
 0x16a   : > { %727 = vrot.lane.b32.xlu0 %v2228_v46, %s3181_s18  ;;  %667 = vrot.lane.b32.xlu1 %v2228_v46, %s3183_s10 }
 0x16b   : > { %v2254_v42 = vpop.permute.xlu0 %1287  ;;  %v2256_v24 = vpop.permute.xlu1 %602 }
 0x16e   : > { %837 = vrot.lane.b32.xlu0 %v2258_v23, %s1715_s28  ;;  %777 = vrot.lane.b32.xlu1 %v2258_v23, %s3178_s20 }
 0x16f   : > { %v2267_v35 = vpop.permute.xlu0 %950  ;;  %v747_v6 = vpop.permute.xlu1 %746 }
 0x170   : > { %3224 = vst [vmem:[#allocation42_spill] sm:$0xff] %v2267_v35  ;;  %v751_v40 = vsel %vm750_vm4, %v747_v6, %v2006_v0  ;;  %v752_v21 = vsel %vm750_vm4, %v745_v33, %v747_v6  ;;  %v1008_v6 = vsel %vm1005_vm8, %v2144_v48, %v1000_v39  ;;  %v1161_v35 = vrot.slane %v2096_v32, %v2170_v2 }
 0x171   : > { %v2274_v38 = vsel %vm772_vm6, %v752_v21, 0.0  ;;  %v2276_v31 = vsel %vm773_vm7, %v751_v40, 0.0  ;;  %v1017_v40 = vrot.slane %v2083_v28, %v2170_v2  ;;  %v1031_v21 = vsel %vm1028_vm9, %v1008_v6, 0.0 }
 0x172   : > { %854 = vrot.lane.b32.xlu0 %v2258_v23, %s3179_s19  ;;  %794 = vrot.lane.b32.xlu1 %v2258_v23, %s3180_s17  ;;  %vm1170_vm14 = vcmp.eq.s32.totalorder %v1161_v35, 1  ;;  %vm489_vm6 = vcmp.lt.s32.totalorder %v2176_v49, 48  ;;  %vm525_vm9 = vcmp.lt.s32.totalorder %v2176_v49, 16 }
 0x173   : > { %v2285_v17 = vpop.permute.xlu0 %967  ;;  %v2287_v0 = vpop.permute.xlu1 %890  ;;  %vm1026_vm10 = vcmp.eq.s32.totalorder %v1017_v40, 1  ;;  %v472_v40 = vrot.slane %v2173_v5, %v2076_v27 }
 0x174   : > { %3225 = vst [vmem:[#allocation43_spill] sm:$0xff] %v2285_v17  ;;  %3226 = vst [vmem:[#allocation44_spill] sm:$0xff] %v2287_v0  ;;  %v3229_v17 = vrot.slane %v2083_v28, %v2076_v27 }
 0x175   : > { %vm478_vm1 = vcmp.eq.s32.totalorder %v472_v40, 1 }
 0x176   : > { %871 = vrot.lane.b32.xlu0 %v2258_v23, %s3181_s18  ;;  %811 = vrot.lane.b32.xlu1 %v2258_v23, %s3183_s10  ;;  %vm1027_vm11 = vcmp.eq.s32.totalorder %v3229_v17, 1 }
 0x177   : > { %v2298_v33 = vpop.permute.xlu0 %984  ;;  %v2300_v44 = vpop.permute.xlu1 %907 }
 0x178   : > { %3227 = vst [vmem:[#allocation45_spill] sm:$0xff] %v2298_v33  ;;  %3228 = vst [vmem:[#allocation46_spill] sm:$0xff] %v2300_v44  ;;  %v1152_v44 = vsel %vm1149_vm12, %v2134_v43, %v1144_v10 }
 0x179   : > { %v2338_v37 = vsel %vm1172_vm13, %v1152_v44, 0.0  ;;  %v626_v44 = vrot.slane %v2201_v29, %v2044_v16 }
 0x17a   : > { %1070 = vrot.lane.b32.xlu1 %v1031_v21, %s3183_s10  ;;  %1036 = vrot.lane.b32.xlu0 %v1031_v21, %s3178_s20 }
 0x17b   : > { %v1002_v33 = vpop.permute.xlu0 %1001  ;;  %v2312_v47 = vpop.permute.xlu1 %924  ;;  %vm629_vm4 = vcmp.eq.s32.totalorder %v626_v44, 1 }
 0x17c   : > { %3230 = vst [vmem:[#allocation47_spill] sm:$0xff] %v2312_v47  ;;  %v1006_v6 = vsel %vm1005_vm8, %v1002_v33, %v2144_v48  ;;  %v1007_v36 = vsel %vm1005_vm8, %v1000_v39, %v1002_v33  ;;  %v3233_v39 = vrot.slane %v2096_v32, %v2076_v27  ;;  %v458_v32 = vsel %vm456_vm15, %v2188_v18, %v2243_v41 }
 0x17d   : > { %v2321_v28 = vsel %vm1026_vm10, %v1007_v36, 0.0  ;;  %v2323_v17 = vsel %vm1027_vm11, %v1006_v6, 0.0  ;;  %v2351_v35 = vsel %vm478_vm1, %v458_v32, 0.0  ;;  %v457_v18 = vsel %vm456_vm15, %v2243_v41, %v1980_v51 }
 0x17e   : > { %3231 = vst [vmem:[#allocation48_spill] sm:$0xff] %v2321_v28  ;;  %3232 = vst [vmem:[#allocation49_spill] sm:$0xff] %v2323_v17  ;;  %1096 = vrot.lane.b32.xlu1 %v1031_v21, %s1715_s28  ;;  %1053 = vrot.lane.b32.xlu0 %v1031_v21, %s3180_s17  ;;  %vm1171_vm0 = vcmp.eq.s32.totalorder %v3233_v39, 1  ;;  %v608_v51 = vsel %vm606_vm2, %v2186_v14, %v2256_v24  ;;  %v607_v14 = vsel %vm606_vm2, %v2256_v24, %v1990_v56 }
 0x17f   : > { %v1146_v48 = vpop.permute.xlu1 %1145  ;;  %vm507_vm8 = vcmp.lt.s32.totalorder %v2176_v49, 32  ;;  %vm1293_vm10 = vcmp.lt.s32.totalorder %v2176_v49, 125  ;;  %vm588_vm1 = vcmp.lt.s32.totalorder %v2176_v49, 80 }
 0x180   : > { %v1150_v36 = vsel %vm1149_vm12, %v1146_v48, %v2134_v43  ;;  %v1151_v33 = vsel %vm1149_vm12, %v1144_v10, %v1146_v48  ;;  %v476_v43 = vrot.slane %v2173_v5, %v2044_v16  ;;  %v622_v5 = vrot.slane %v2201_v29, %v2076_v27 }
 0x181   : > { %v2340_v6 = vsel %vm1170_vm14, %v1151_v33, 0.0  ;;  %v2342_v47 = vsel %vm1171_vm0, %v1150_v36, 0.0  ;;  %vm552_vm14 = vcmp.lt.s32.totalorder %v2176_v49, 112  ;;  %vm570_vm0 = vcmp.lt.s32.totalorder %v2176_v49, 96 }
 0x182   : > { %3234 = vst [vmem:[#allocation50_spill] sm:$0xff] %v2340_v6  ;;  %1113 = vrot.lane.b32.xlu1 %v1031_v21, %s3179_s19  ;;  %1240 = vrot.lane.b32.xlu0 %v2338_v37, %s1715_s28  ;;  %vm479_vm3 = vcmp.eq.s32.totalorder %v476_v43, 1  ;;  %vm628_vm15 = vcmp.eq.s32.totalorder %v622_v5, 1 }
 0x183   : > { %v482_v10 = vsel %vm479_vm3, %v457_v18, 0.0  ;;  %v2383_v41 = vsel %vm628_vm15, %v608_v51, 0.0  ;;  %v2424_v56 = vpop.permute.xlu1 %1289 }
 0x186   : > { %1130 = vrot.lane.b32.xlu1 %v1031_v21, %s3181_s18  ;;  %485 = vrot.lane.b32.xlu0 %v2351_v35, %s3178_s20  ;;  %v632_v21 = vsel %vm629_vm4, %v607_v14, 0.0 }
 0x18a   : > { %1180 = vrot.lane.b32.xlu1 %v2338_v37, %s3178_s20  ;;  %503 = vrot.lane.b32.xlu0 %v2351_v35, %s3180_s17 }
 0x18e   : > { %1197 = vrot.lane.b32.xlu1 %v2338_v37, %s3180_s17  ;;  %521 = vrot.lane.b32.xlu0 %v2351_v35, %s3183_s10 }
 0x192   : > { %1214 = vrot.lane.b32.xlu1 %v2338_v37, %s3183_s10  ;;  %550 = vrot.lane.b32.xlu0 %v482_v10, %s1715_s28 }
 0x196   : > { %568 = vrot.lane.b32.xlu0 %v482_v10, %s3179_s19  ;;  %487 = vrot.lane.b32.xlu1 %v482_v10, %s3178_s20 }
 0x19a   : > { %586 = vrot.lane.b32.xlu0 %v482_v10, %s3181_s18  ;;  %505 = vrot.lane.b32.xlu1 %v482_v10, %s3180_s17 }
 0x19e   : > { %523 = vrot.lane.b32.xlu1 %v482_v10, %s3183_s10  ;;  %635 = vrot.lane.b32.xlu0 %v2383_v41, %s3178_s20 }
 0x1a2   : > { %548 = vrot.lane.b32.xlu1 %v2351_v35, %s1715_s28  ;;  %652 = vrot.lane.b32.xlu0 %v2383_v41, %s3180_s17 }
 0x1a6   : > { %566 = vrot.lane.b32.xlu1 %v2351_v35, %s3179_s19  ;;  %669 = vrot.lane.b32.xlu0 %v2383_v41, %s3183_s10 }
 0x1aa   : > { %584 = vrot.lane.b32.xlu1 %v2351_v35, %s3181_s18  ;;  %697 = vrot.lane.b32.xlu0 %v632_v21, %s1715_s28 }
 0x1ae   : > { %714 = vrot.lane.b32.xlu0 %v632_v21, %s3179_s19  ;;  %637 = vrot.lane.b32.xlu1 %v632_v21, %s3178_s20 }
 0x1b2   : > { %731 = vrot.lane.b32.xlu0 %v632_v21, %s3181_s18  ;;  %654 = vrot.lane.b32.xlu1 %v632_v21, %s3180_s17 }
 0x1b6   : > { %671 = vrot.lane.b32.xlu1 %v632_v21, %s3183_s10  ;;  %779 = vrot.lane.b32.xlu0 %v2274_v38, %s3178_s20 }
 0x1ba   : > { %695 = vrot.lane.b32.xlu1 %v2383_v41, %s1715_s28  ;;  %796 = vrot.lane.b32.xlu0 %v2274_v38, %s3180_s17 }
 0x1be   : > { %712 = vrot.lane.b32.xlu1 %v2383_v41, %s3179_s19  ;;  %813 = vrot.lane.b32.xlu0 %v2274_v38, %s3183_s10 }
 0x1c2   : > { %729 = vrot.lane.b32.xlu1 %v2383_v41, %s3181_s18  ;;  %841 = vrot.lane.b32.xlu0 %v2276_v31, %s1715_s28 }
 0x1c6   : > { %858 = vrot.lane.b32.xlu0 %v2276_v31, %s3179_s19  ;;  %781 = vrot.lane.b32.xlu1 %v2276_v31, %s3178_s20 }
 0x1c8   : > { %v2430_v24 = vpop.permute.xlu0 %546  ;;  %v2432_v29 = vpop.permute.xlu1 %483 }
 0x1ca   : > { %875 = vrot.lane.b32.xlu0 %v2276_v31, %s3181_s18  ;;  %798 = vrot.lane.b32.xlu1 %v2276_v31, %s3180_s17 }
 0x1cc   : > { %v2438_v40 = vpop.permute.xlu0 %564  ;;  %v2440_v39 = vpop.permute.xlu1 %501 }
 0x1ce   : > { %1032 = vrot.lane.b32.xlu0 %v2321_v28, %s3178_s20  ;;  %815 = vrot.lane.b32.xlu1 %v2276_v31, %s3183_s10 }
 0x1d0   : > { %v2446_v48 = vpop.permute.xlu0 %582  ;;  %v2448_v36 = vpop.permute.xlu1 %519 }
 0x1d2   : > { %1049 = vrot.lane.b32.xlu0 %v2321_v28, %s3180_s17  ;;  %839 = vrot.lane.b32.xlu1 %v2274_v38, %s1715_s28 }
 0x1d4   : > { %v2454_v33 = vpop.permute.xlu0 %693  ;;  %v2456_v32 = vpop.permute.xlu1 %633 }
 0x1d6   : > { %1068 = vrot.lane.b32.xlu0 %v2323_v17, %s3183_s10  ;;  %856 = vrot.lane.b32.xlu1 %v2274_v38, %s3179_s19 }
 0x1d8   : > { %v2462_v31 = vpop.permute.xlu0 %710  ;;  %v2464_v43 = vpop.permute.xlu1 %650 }
 0x1da   : > { %1094 = vrot.lane.b32.xlu0 %v2323_v17, %s1715_s28  ;;  %873 = vrot.lane.b32.xlu1 %v2274_v38, %s3181_s18 }
 0x1dc   : > { %v2470_v18 = vpop.permute.xlu0 %727  ;;  %v2472_v10 = vpop.permute.xlu1 %667 }
 0x1de   : > { %1111 = vrot.lane.b32.xlu0 %v2323_v17, %s3179_s19  ;;  %1034 = vrot.lane.b32.xlu1 %v2323_v17, %s3178_s20 }
 0x1e0   : > { %v2478_v5 = vpop.permute.xlu0 %837  ;;  %v2480_v51 = vpop.permute.xlu1 %777 }
 0x1e2   : > { %1128 = vrot.lane.b32.xlu0 %v2323_v17, %s3181_s18  ;;  %1051 = vrot.lane.b32.xlu1 %v2323_v17, %s3180_s17 }
 0x1e4   : > { %v2486_v44 = vpop.permute.xlu0 %854  ;;  %v2488_v14 = vpop.permute.xlu1 %794 }
 0x1e6   : > { %1066 = vrot.lane.b32.xlu1 %v2321_v28, %s3183_s10  ;;  %1178 = vrot.lane.b32.xlu0 %v2342_v47, %s3178_s20 }
 0x1e8   : > { %v2494_v21 = vpop.permute.xlu0 %871  ;;  %v2496_v26 = vpop.permute.xlu1 %811 }
 0x1e9   : > { %3235 = vst [vmem:[#allocation51_spill] sm:$0xff] %v2494_v21 }
 0x1ea   : > { %1092 = vrot.lane.b32.xlu1 %v2321_v28, %s1715_s28  ;;  %1195 = vrot.lane.b32.xlu0 %v2342_v47, %s3180_s17 }
 0x1ec   : > { %v2502_v17 = vpop.permute.xlu0 %1036  ;;  %v2504_v1 = vpop.permute.xlu1 %1070 }
 0x1ed   : > { %3236 = vst [vmem:[#allocation52_spill] sm:$0xff] %v2502_v17  ;;  %3237 = vst [vmem:[#allocation53_spill] sm:$0xff] %v2504_v1  ;;  %v1297_v17 = vadd.s32 3, %v2021_v7 }
 0x1ee   : > { %1109 = vrot.lane.b32.xlu1 %v2321_v28, %s3179_s19  ;;  %1212 = vrot.lane.b32.xlu0 %v2342_v47, %s3183_s10 }
 0x1ef   : > { %vm1298_vm2 = vcmp.ge.s32.totalorder %v1297_v17, 0  ;;  %vm1299_vm5 = vcmp.lt.s32.totalorder %v1297_v17, 16 }
 0x1f0   : > { %v2510_v34 = vpop.permute.xlu0 %1053  ;;  %v2512_v21 = vpop.permute.xlu1 %1096  ;;  %vm1300_vm7 = vmand %vm1298_vm2, %vm1299_vm5 }
 0x1f1   : > { %3238 = vst [vmem:[#allocation54_spill] sm:$0xff] %v2510_v34  ;;  %3239 = vst [vmem:[#allocation55_spill] sm:$0xff] %v2512_v21 }
 0x1f2   : > { %1126 = vrot.lane.b32.xlu1 %v2321_v28, %s3181_s18  ;;  %1236 = vrot.lane.b32.xlu0 %v2340_v6, %s1715_s28 }
 0x1f4   : > { %v2519_v0 = vpop.permute.xlu0 %1240  ;;  %v2521_v1 = vpop.permute.xlu1 %1113 }
 0x1f5   : > { %3240 = vst [vmem:[#allocation56_spill] sm:$0xff] %v2519_v0  ;;  %3241 = vst [vmem:[#allocation57_spill] sm:$0xff] %v2521_v1 }
 0x1f6   : > { %1176 = vrot.lane.b32.xlu1 %v2340_v6, %s3178_s20  ;;  %1253 = vrot.lane.b32.xlu0 %v2340_v6, %s3179_s19 }
 0x1f8   : > { %v486_v21 = vpop.permute.xlu0 %485  ;;  %v2528_v28 = vpop.permute.xlu1 %1130 }
 0x1f9   : > { %3242 = vst [vmem:[#allocation58_spill] sm:$0xff] %v2528_v28  ;;  %v490_v7 = vsel %vm489_vm6, %v2432_v29, %v486_v21  ;;  %v1301_v28 = vsel %vm1300_vm7, 1, %v3213_v15 }
 0x1fa   : > { %v498_v0 = vmul.f32 %v1982_v52, %v490_v7  ;;  %1193 = vrot.lane.b32.xlu1 %v2340_v6, %s3180_s17  ;;  %1257 = vrot.lane.b32.xlu0 %v2338_v37, %s3179_s19  ;;  %v1305_v34 = vrot.slane %v1301_v28, %v2170_v2 }
 0x1fc   : > { %v504_v17 = vpop.permute.xlu0 %503  ;;  %v2539_v1 = vpop.permute.xlu1 %1180  ;;  %v500_v7 = vadd.f32 %v498_v0, %v1978_v50  ;;  %v1313_v0 = vrot.slane %v1301_v28, %v2044_v16  ;;  %vm1314_vm11 = vcmp.eq.s32.totalorder %v1305_v34, 1  ;;  %v543_v16 = vmul.f32 %v1988_v55, %v2351_v35 }
 0x1fd   : > { %3243 = vst [vmem:[#allocation59_spill] sm:$0xff] %v2539_v1  ;;  %v508_v21 = vsel %vm507_vm8, %v2440_v39, %v504_v17  ;;  %v1295_v17 = vsel %vm1293_vm10, %v2254_v42, %v2424_v56 }
 0x1fe   : > { %v516_v20 = vmul.f32 %v1984_v53, %v508_v21  ;;  %1210 = vrot.lane.b32.xlu1 %v2340_v6, %s3183_s10  ;;  %1270 = vrot.lane.b32.xlu0 %v2340_v6, %s3181_s18  ;;  %v2573_v34 = vsel %vm1314_vm11, %v1295_v17, 0.0  ;;  %vm1316_vm12 = vcmp.eq.s32.totalorder %v1313_v0, 1 }
 0x200   : > { %v518_v1 = vadd.f32 %v516_v20, %v500_v7  ;;  %v522_v15 = vpop.permute.xlu0 %521  ;;  %v2553_v22 = vpop.permute.xlu1 %1197 }
 0x201   : > { %v526_v2 = vsel %vm525_vm9, %v2448_v36, %v522_v15  ;;  %v1296_v15 = vsel %vm1293_vm10, %v2138_v45, %v2254_v42 }
 0x202   : > { %v534_v21 = vmul.f32 %v1986_v54, %v526_v2  ;;  %1238 = vrot.lane.b32.xlu1 %v2342_v47, %s1715_s28  ;;  %1274 = vrot.lane.b32.xlu0 %v2338_v37, %s3181_s18  ;;  %v1532_v37 = vld [vmem:[%s3118_s2 + $0x30] sm:$0xff]  ;;  %v2586_v17 = vsel %vm1316_vm12, %v1296_v15, 0.0 }
 0x204   : > { %v536_v20 = vadd.f32 %v534_v21, %v518_v1  ;;  %v551_v7 = vpop.permute.xlu0 %550  ;;  %v2569_v6 = vpop.permute.xlu1 %1214 }
 0x205   : > { %3244 = vst [vmem:[#allocation60_spill] sm:$0xff] %v2569_v6 }
 0x206   : > { %1255 = vrot.lane.b32.xlu1 %v2342_v47, %s3179_s19  ;;  %1320 = vrot.lane.b32.xlu0 %v2573_v34, %s3178_s20  ;;  %v545_v1 = vadd.f32 %v543_v16, %v536_v20 }
 0x208   : > { %v569_v35 = vpop.permute.xlu0 %568  ;;  %v488_v2 = vpop.permute.xlu1 %487 }
 0x209   : > { %v491_v0 = vsel %vm489_vm6, %v488_v2, %v2432_v29  ;;  %v1539_v29 = vld [vmem:[%s3118_s2 + $0x68] sm:$0xff] }
 0x20a   : > { %v497_v42 = vmul.f32 %v1982_v52, %v491_v0  ;;  %1330 = vperm.xlu1 %1636, %v1532_v37   ;;  %1324 = vrot.lane.b32.xlu0 %v2586_v17, %s3178_s20  ;;  %v1309_v52 = vrot.slane %v1301_v28, %v2076_v27  ;;  %v1294_v27 = vsel %vm1293_vm10, %v2424_v56, %v2138_v45 }
 0x20c   : > { %v587_v21 = vpop.permute.xlu0 %586  ;;  %v506_v20 = vpop.permute.xlu1 %505  ;;  %v499_v6 = vadd.f32 %v497_v42, %v1978_v50  ;;  %vm1315_vm13 = vcmp.eq.s32.totalorder %v1309_v52, 1 }
 0x20d   : > { %v509_v16 = vsel %vm507_vm8, %v506_v20, %v2440_v39  ;;  %v542_v39 = vmul.f32 %v1988_v55, %v2194_v11  ;;  %v2625_v20 = vsel %vm1315_vm13, %v1294_v27, 0.0 }
 0x20e   : > { %v515_v15 = vmul.f32 %v1984_v53, %v509_v16  ;;  %1272 = vrot.lane.b32.xlu1 %v2342_v47, %s3181_s18  ;;  %1337 = vrot.lane.b32.xlu0 %v2573_v34, %s3180_s17 }
 0x210   : > { %v517_v37 = vadd.f32 %v515_v15, %v499_v6  ;;  %v636_v2 = vpop.permute.xlu0 %635  ;;  %v524_v0 = vpop.permute.xlu1 %523 }
 0x211   : > { %v527_v50 = vsel %vm525_vm9, %v524_v0, %v2448_v36 }
 0x212   : > { %v533_v53 = vmul.f32 %v1986_v54, %v527_v50  ;;  %1347 = vperm.xlu1 %1636, %v1539_v29   ;;  %1341 = vrot.lane.b32.xlu0 %v2586_v17, %s3180_s17 }
 0x214   : > { %v535_v28 = vadd.f32 %v533_v53, %v517_v37  ;;  %v653_v6 = vpop.permute.xlu0 %652  ;;  %v549_v36 = vpop.permute.xlu1 %548 }
 0x215   : > { %v553_v54 = vsel %vm552_vm14, %v549_v36, %v551_v7  ;;  %v554_v42 = vsel %vm552_vm14, %v2430_v24, %v549_v36  ;;  %v1546_v24 = vld [vmem:[%s3118_s2 + $0xa0] sm:$0xff]  ;;  %v656_v36 = vsel %vm507_vm8, %v2464_v43, %v653_v6 }
 0x216   : > { %v544_v16 = vadd.f32 %v542_v39, %v535_v28  ;;  %v560_v45 = vmul.f32 %v1992_v57, %v554_v42  ;;  %v561_v56 = vmul.f32 %v1992_v57, %v553_v54  ;;  %1354 = vrot.lane.b32.xlu0 %v2573_v34, %s3183_s10  ;;  %1322 = vrot.lane.b32.xlu1 %v2625_v20, %s3178_s20 }
 0x218   : > { %v562_v55 = vadd.f32 %v560_v45, %v544_v16  ;;  %v563_v11 = vadd.f32 %v561_v56, %v545_v1  ;;  %v670_v7 = vpop.permute.xlu0 %669  ;;  %v567_v15 = vpop.permute.xlu1 %566  ;;  %v1567_v1 = vld [vmem:[%s3118_s2 + $0x148] sm:$0xff]  ;;  %v664_v45 = vmul.f32 %v1998_v60, %v656_v36  ;;  %v1574_v56 = vld [vmem:[%s3118_s2 + $0x180] sm:$0xff] }
 0x219   : > { %v571_v52 = vsel %vm570_vm0, %v567_v15, %v569_v35  ;;  %v572_v57 = vsel %vm570_vm0, %v2438_v40, %v567_v15  ;;  %v639_v40 = vsel %vm489_vm6, %v2456_v32, %v636_v2 }
 0x21a   : > { %v578_v29 = vmul.f32 %v1996_v59, %v572_v57  ;;  %v579_v37 = vmul.f32 %v1996_v59, %v571_v52  ;;  %1358 = vrot.lane.b32.xlu0 %v2586_v17, %s3183_s10  ;;  %1364 = vperm.xlu1 %1636, %v1546_v24   ;;  %v647_v2 = vmul.f32 %v1994_v58, %v639_v40 }
 0x21b   : > { %v689_v40 = vmul.f32 %v2004_v63, %v2228_v46  ;;  %v690_v46 = vmul.f32 %v2004_v63, %v2383_v41 }
 0x21c   : > { %v580_v0 = vadd.f32 %v578_v29, %v562_v55  ;;  %v581_v35 = vadd.f32 %v579_v37, %v563_v11  ;;  %v698_v50 = vpop.permute.xlu0 %697  ;;  %v585_v53 = vpop.permute.xlu1 %584 }
 0x21d   : > { %v589_v59 = vsel %vm588_vm1, %v585_v53, %v587_v21  ;;  %v590_v27 = vsel %vm588_vm1, %v2446_v48, %v585_v53  ;;  %v1553_v48 = vld [vmem:[%s3118_s2 + $0xd8] sm:$0xff] }
 0x21e   : > { %v596_v28 = vmul.f32 %v2000_v61, %v590_v27  ;;  %v597_v39 = vmul.f32 %v2000_v61, %v589_v59  ;;  %1407 = vperm.xlu0 %1635, %v1567_v1   ;;  %1339 = vrot.lane.b32.xlu1 %v2625_v20, %s3180_s17  ;;  %v1560_v1 = vld [vmem:[%s3118_s2 + $0x110] sm:$0xff] }
 0x220   : > { %v598_v54 = vadd.f32 %v596_v28, %v580_v0  ;;  %v599_v21 = vadd.f32 %v597_v39, %v581_v35  ;;  %v715_v42 = vpop.permute.xlu0 %714  ;;  %v638_v16 = vpop.permute.xlu1 %637 }
 0x221   : > { %v640_v61 = vsel %vm489_vm6, %v638_v16, %v2456_v32 }
 0x222   : > { %v649_v6 = vadd.f32 %v647_v2, %v599_v21  ;;  %1382 = vrot.lane.b32.xlu0 %v2625_v20, %s1715_s28  ;;  %1373 = vperm.xlu1 %1636, %v1553_v48   ;;  %v646_v11 = vmul.f32 %v1994_v58, %v640_v61 }
 0x224   : > { %v666_v55 = vadd.f32 %v664_v45, %v649_v6  ;;  %v732_v15 = vpop.permute.xlu0 %731  ;;  %v655_v24 = vpop.permute.xlu1 %654  ;;  %v648_v57 = vadd.f32 %v646_v11, %v598_v54 }
 0x225   : > { %v657_v32 = vsel %vm507_vm8, %v655_v24, %v2464_v43 }
 0x226   : > { %v663_v52 = vmul.f32 %v1998_v60, %v657_v32  ;;  %1424 = vperm.xlu0 %1635, %v1574_v56   ;;  %1356 = vrot.lane.b32.xlu1 %v2625_v20, %s3183_s10  ;;  %v673_v60 = vsel %vm525_vm9, %v2472_v10, %v670_v7 }
 0x227   : > { %v681_v27 = vmul.f32 %v2002_v62, %v673_v60 }
 0x228   : > { %v780_v29 = vpop.permute.xlu0 %779  ;;  %v672_v37 = vpop.permute.xlu1 %671  ;;  %v665_v0 = vadd.f32 %v663_v52, %v648_v57 }
 0x229   : > { %v674_v58 = vsel %vm525_vm9, %v672_v37, %v2472_v10  ;;  %v683_v10 = vadd.f32 %v681_v27, %v666_v55  ;;  %v783_v11 = vsel %vm489_vm6, %v2480_v51, %v780_v29 }
 0x22a   : > { %v680_v43 = vmul.f32 %v2002_v62, %v674_v58  ;;  %1399 = vrot.lane.b32.xlu0 %v2625_v20, %s3179_s19  ;;  %1390 = vperm.xlu1 %1636, %v1560_v1  }
 0x22b   : > { %v692_v54 = vadd.f32 %v690_v46, %v683_v10 }
 0x22c   : > { %v682_v35 = vadd.f32 %v680_v43, %v665_v0  ;;  %v797_v53 = vpop.permute.xlu0 %796  ;;  %v696_v59 = vpop.permute.xlu1 %695 }
 0x22d   : > { %v699_v39 = vsel %vm552_vm14, %v696_v59, %v698_v50  ;;  %v700_v50 = vsel %vm552_vm14, %v2454_v33, %v696_v59  ;;  %v800_v29 = vsel %vm507_vm8, %v2488_v14, %v797_v53 }
 0x22e   : > { %v691_v28 = vadd.f32 %v689_v40, %v682_v35  ;;  %1414 = vrot.lane.b32.xlu0 %v2573_v34, %s3181_s18  ;;  %1380 = vrot.lane.b32.xlu1 %v2573_v34, %s1715_s28  ;;  %v707_v62 = vmul.f32 %v2008_v3, %v699_v39  ;;  %v706_v48 = vmul.f32 %v2008_v3, %v700_v50 }
 0x230   : > { %v814_v7 = vpop.permute.xlu0 %813  ;;  %v713_v36 = vpop.permute.xlu1 %712  ;;  %v709_v61 = vadd.f32 %v707_v62, %v692_v54 }
 0x231   : > { %v716_v2 = vsel %vm570_vm0, %v713_v36, %v715_v42  ;;  %v717_v63 = vsel %vm570_vm0, %v2462_v31, %v713_v36  ;;  %v817_v60 = vsel %vm525_vm9, %v2496_v26, %v814_v7 }
 0x232   : > { %1418 = vrot.lane.b32.xlu0 %v2586_v17, %s3181_s18  ;;  %1384 = vrot.lane.b32.xlu1 %v2586_v17, %s1715_s28  ;;  %v724_v21 = vmul.f32 %v2023_v8, %v716_v2  ;;  %v723_v6 = vmul.f32 %v2023_v8, %v717_v63  ;;  %v791_v8 = vmul.f32 %v2010_v4, %v783_v11  ;;  %v3245_v63 = vld [vmem:[#allocation37_spill] sm:$0xff]  ;;  %s242_s28 = sand.u32 1, %s1699_s22  }
 0x233   : > { %v825_v59 = vmul.f32 %v2034_v13, %v817_v60  ;;  %v834_v2 = vmul.f32 %v2055_v19, %v2274_v38  ;;  %v3257_v60 = vld [vmem:[#allocation15_spill] sm:$0xff]  ;;  %s1446_s9 = scalar_lea.sflag [#allocation4], %s242_s28 }
 0x234   : > { %v842_v16 = vpop.permute.xlu0 %841  ;;  %v730_v42 = vpop.permute.xlu1 %729  ;;  %v726_v56 = vadd.f32 %v724_v21, %v709_v61  ;;  %v3247_v61 = vld [vmem:[#allocation44_spill] sm:$0xff] }
 0x235   : > { %v733_v41 = vsel %vm588_vm1, %v730_v42, %v732_v15  ;;  %v734_v45 = vsel %vm588_vm1, %v2470_v18, %v730_v42  ;;  %v708_v15 = vadd.f32 %v706_v48, %v691_v28  ;;  %v833_v28 = vmul.f32 %v2055_v19, %v2258_v23 }
 0x236   : > { %v741_v33 = vmul.f32 %v2032_v12, %v733_v41  ;;  %1397 = vrot.lane.b32.xlu1 %v2573_v34, %s3179_s19  ;;  %v740_v24 = vmul.f32 %v2032_v12, %v734_v45  ;;  %v3246_v41 = vld [vmem:[#allocation7_spill] sm:$0xff] }
 0x237   : > { %v725_v32 = vadd.f32 %v723_v6, %v708_v15  ;;  %v895_v48 = vsel %vm489_vm6, %v3246_v41, %v3245_v63  ;;  %v3248_v45 = vld [vmem:[#allocation51_spill] sm:$0xff]  ;;  %v3251_v15 = vld [vmem:[#allocation9_spill] sm:$0xff] }
 0x238   : > { %v859_v55 = vpop.permute.xlu0 %858  ;;  %v782_v31 = vpop.permute.xlu1 %781  ;;  %v743_v18 = vadd.f32 %v741_v33, %v726_v56 }
 0x239   : > { %v784_v3 = vsel %vm489_vm6, %v782_v31, %v2480_v51  ;;  %v742_v12 = vadd.f32 %v740_v24, %v725_v32  ;;  %v3253_v32 = vld [vmem:[#allocation13_spill] sm:$0xff] }
 0x23a   : > { %1401 = vrot.lane.b32.xlu1 %v2586_v17, %s3179_s19  ;;  %v790_v52 = vmul.f32 %v2010_v4, %v784_v3  ;;  %v793_v1 = vadd.f32 %v791_v8, %v743_v18  ;;  %v808_v17 = vmul.f32 %v2025_v9, %v800_v29  ;;  %v3250_v3 = vld [vmem:[#allocation39_spill] sm:$0xff]  ;;  %v3252_v18 = vld [vmem:[#allocation46_spill] sm:$0xff]  ;;  %s1523_s19 = sshll.u32 %s242_s28, 4 }
 0x23b   : > { %v912_v24 = vsel %vm507_vm8, %v3251_v15, %v3250_v3  ;;  %v911_v8 = vsel %vm507_vm8, %v3250_v3, %v3252_v18  ;;  %v3265_v3 = vld [vmem:[#allocation14_spill] sm:$0xff]  ;;  %v3266_v18 = vld [vmem:[#allocation43_spill] sm:$0xff]  ;;  %s244_s10 = scalar_lea.vmem [#allocation3], %s1523_s19 }
 0x23c   : > { %v876_v57 = vpop.permute.xlu0 %875  ;;  %v799_v37 = vpop.permute.xlu1 %798  ;;  %v792_v4 = vadd.f32 %v790_v52, %v742_v12  ;;  %v810_v35 = vadd.f32 %v808_v17, %v793_v1  ;;  %v901_v52 = vmul.f32 %v3253_v32, %v895_v48  ;;  %v3254_v1 = vld [vmem:[#allocation41_spill] sm:$0xff]  ;;  %s1460_s14 = sshll.u32 %s244_s10, 4  ;;  %s1461_s14 = int_to_ptr.vmem [resolvable:$true] %s1460_s14 }
 0x23d   : > { %v801_v51 = vsel %vm507_vm8, %v799_v37, %v2488_v14  ;;  %s1647_s11 = scalar_lea.vmem %s1461_s14, 256 }
 0x23e   : > { %v807_v58 = vmul.f32 %v2025_v9, %v801_v51  ;;  %1416 = vrot.lane.b32.xlu1 %v2625_v20, %s3181_s18  ;;  %v827_v7 = vadd.f32 %v825_v59, %v810_v35  ;;  %v919_v35 = vmul.f32 %v3257_v60, %v911_v8  ;;  %v3258_v59 = vld [vmem:[#allocation17_spill] sm:$0xff]  ;;  %v3267_v8 = vld [vmem:[#allocation38_spill] sm:$0xff]  ;;  %s1581_s18 = sshll.u32 %s1780_s25, 8  ;;  %p1648_p11 = scmp.ne.s32.totalorder %s1461_s14, %s1647_s11 }
 0x23f   : > { %s3081_s29 = scalar_lea.hbm %s3122_s6, %s1581_s18  ;;  %s1723_s25 = smov [#allocation3]  }
 0x240   : > { %v2753_v0 = vpop.permute.xlu0 %1032  ;;  %v816_v43 = vpop.permute.xlu1 %815  ;;  %v809_v53 = vadd.f32 %v807_v58, %v792_v4  ;;  %v3255_v58 = vld [vmem:[#allocation10_spill] sm:$0xff]  ;;  %v3256_v4 = vld [vmem:[#allocation47_spill] sm:$0xff]  ;;  %p1649_p12 = pnand %p1648_p11, %p1797_p5  ;;  %s1651_s17 = sshll.u32 %s1723_s25, 4  ;;  %s1652_s17 = int_to_ptr.vmem [resolvable:$false] %s1651_s17 }
 0x241   : > { %v818_v14 = vsel %vm525_vm9, %v816_v43, %v2496_v26  ;;  %v929_v17 = vsel %vm525_vm9, %v3255_v58, %v3254_v1  ;;  %v928_v43 = vsel %vm525_vm9, %v3254_v1, %v3256_v4  ;;  %v3269_v1 = vld [vmem:[#allocation16_spill] sm:$0xff]  ;;  %s1653_s13 = scalar_lea.vmem %s1652_s17, 512  ;;  %p1654_p0 = scmp.lt.s32.totalorder %s1461_s14, %s1652_s17 }
 0x242   : > { %v824_v40 = vmul.f32 %v2034_v13, %v818_v14  ;;  %v918_v14 = vmul.f32 %v3257_v60, %v912_v24  ;;  %v3271_v60 = vld [vmem:[#allocation40_spill] sm:$0xff]  ;;  %p1650_p13 = pneg %p1649_p12  ;;  %p1655_p1 = scmp.lt.s32.totalorder %s1653_s13, %s1647_s11 }
 0x244   : > { %v826_v27 = vadd.f32 %v824_v40, %v809_v53  ;;  %v2763_v9 = vpop.permute.xlu0 %1049  ;;  %v840_v39 = vpop.permute.xlu1 %839  ;;  %p1656_p2 = por %p1655_p1, %p1654_p0 }
 0x245   : > { %v843_v10 = vsel %vm552_vm14, %v840_v39, %v842_v16  ;;  %v844_v26 = vsel %vm552_vm14, %v2478_v5, %v840_v39  ;;  %v836_v5 = vadd.f32 %v834_v2, %v827_v7 }
 0x246   : > { %v835_v36 = vadd.f32 %v833_v28, %v826_v27  ;;  %v850_v13 = vmul.f32 %v2067_v25, %v844_v26  ;;  %v851_v46 = vmul.f32 %v2067_v25, %v843_v10  ;;  %v935_v27 = vmul.f32 %v3258_v59, %v929_v17  ;;  %p1657_p3 = pnand %p1656_p2, %p1650_p13 }
 0x247   : > { %v936_v28 = vmul.f32 %v3258_v59, %v928_v43  ;;  %v3270_v43 = vld [vmem:[#allocation45_spill] sm:$0xff] }
 0x248   : > { %v2776_v62 = vpop.permute.xlu0 %1068  ;;  %v857_v23 = vpop.permute.xlu1 %856  ;;  %v852_v19 = vadd.f32 %v850_v13, %v835_v36  ;;  %v853_v38 = vadd.f32 %v851_v46, %v836_v5  ;;  %v3259_v13 = vld [vmem:[#allocation6_spill] sm:$0xff]  ;;  %v3260_v46 = vld [vmem:[#allocation12_spill] sm:$0xff]  ;;  %v3272_v59 = vld [vmem:[#allocation21_spill] sm:$0xff] }
 0x249   : > { %v860_v50 = vsel %vm570_vm0, %v857_v23, %v859_v55  ;;  %v861_v54 = vsel %vm570_vm0, %v2486_v44, %v857_v23  ;;  %v894_v44 = vsel %vm489_vm6, %v3245_v63, %v3247_v61  ;;  %v3249_v55 = vld [vmem:[#allocation11_spill] sm:$0xff]  ;;  %v944_v23 = vmul.f32 %v3260_v46, %v3259_v13 }
 0x24a   : > { %v867_v21 = vmul.f32 %v2087_v30, %v861_v54  ;;  %v868_v16 = vmul.f32 %v2087_v30, %v860_v50  ;;  %v3261_v50 = vld [vmem:[#allocation8_spill] sm:$0xff] }
 0x24b   : > { %v945_v54 = vmul.f32 %v3260_v46, %v3261_v50 }
 0x24c   : > { %v2785_v42 = vpop.permute.xlu0 %1094  ;;  %v874_v25 = vpop.permute.xlu1 %873  ;;  %v869_v6 = vadd.f32 %v867_v21, %v852_v19  ;;  %v870_v56 = vadd.f32 %v868_v16, %v853_v38 }
 0x24d   : > { %v877_v33 = vsel %vm588_vm1, %v874_v25, %v876_v57  ;;  %v878_v30 = vsel %vm588_vm1, %v3248_v45, %v874_v25  ;;  %v902_v57 = vmul.f32 %v3253_v32, %v894_v44  ;;  %v972_v32 = vsel %vm570_vm0, %v3267_v8, %v3266_v18  ;;  %v3278_v8 = vld [vmem:[#allocation53_spill] sm:$0xff] }
 0x24e   : > { %v884_v31 = vmul.f32 %v3249_v55, %v878_v30  ;;  %v885_v11 = vmul.f32 %v3249_v55, %v877_v33  ;;  %v3262_v30 = vld [vmem:[#allocation42_spill] sm:$0xff]  ;;  %v3264_v55 = vld [vmem:[#allocation19_spill] sm:$0xff]  ;;  %v978_v58 = vmul.f32 %v3269_v1, %v972_v32 }
 0x250   : > { %v886_v37 = vadd.f32 %v884_v31, %v869_v6  ;;  %v887_v29 = vadd.f32 %v885_v11, %v870_v56  ;;  %v2812_v51 = vpop.permute.xlu0 %1111  ;;  %v1035_v12 = vpop.permute.xlu1 %1034  ;;  %v3263_v6 = vld [vmem:[#allocation36_spill] sm:$0xff]  ;;  %v954_v31 = vsel %vm552_vm14, %v3262_v30, %v3264_v55 }
 0x251   : > { %v955_v56 = vsel %vm552_vm14, %v3263_v6, %v3262_v30  ;;  %v1038_v50 = vsel %vm489_vm6, %v2753_v0, %v1035_v12  ;;  %v3276_v6 = vld [vmem:[#allocation54_spill] sm:$0xff] }
 0x252   : > { %v903_v53 = vadd.f32 %v901_v52, %v886_v37  ;;  %v904_v40 = vadd.f32 %v902_v57, %v887_v29  ;;  %v961_v15 = vmul.f32 %v3265_v3, %v955_v56  ;;  %v962_v52 = vmul.f32 %v3265_v3, %v954_v31  ;;  %v3268_v37 = vld [vmem:[#allocation20_spill] sm:$0xff] }
 0x253   : > { %v971_v29 = vsel %vm570_vm0, %v3266_v18, %v3268_v37  ;;  %v1056_v56 = vsel %vm507_vm8, %v3276_v6, %v2763_v9  ;;  %v3285_v6 = vld [vmem:[#allocation57_spill] sm:$0xff] }
 0x254   : > { %v920_v39 = vadd.f32 %v918_v14, %v903_v53  ;;  %v921_v10 = vadd.f32 %v919_v35, %v904_v40  ;;  %v2826_v26 = vpop.permute.xlu0 %1128  ;;  %v1052_v7 = vpop.permute.xlu1 %1051  ;;  %v989_v14 = vsel %vm588_vm1, %v3271_v60, %v3270_v43  ;;  %v979_v53 = vmul.f32 %v3269_v1, %v971_v29 }
 0x255   : > { %v1055_v3 = vsel %vm507_vm8, %v2763_v9, %v1052_v7  ;;  %v3279_v9 = vld [vmem:[#allocation28_spill] sm:$0xff] }
 0x256   : > { %v937_v36 = vadd.f32 %v935_v27, %v920_v39  ;;  %v938_v2 = vadd.f32 %v936_v28, %v921_v10  ;;  %v988_v27 = vsel %vm588_vm1, %v3270_v43, %v3272_v59  ;;  %v3273_v28 = vld [vmem:[#allocation18_spill] sm:$0xff] }
 0x257   : > { %v995_v39 = vmul.f32 %v3273_v28, %v989_v14  ;;  %v996_v13 = vmul.f32 %v3273_v28, %v988_v27 }
 0x258   : > { %v946_v5 = vadd.f32 %v944_v23, %v937_v36  ;;  %v947_v21 = vadd.f32 %v945_v54, %v938_v2  ;;  %v2832_v16 = vpop.permute.xlu0 %1178  ;;  %v1067_v19 = vpop.permute.xlu1 %1066  ;;  %v3274_v36 = vld [vmem:[#allocation52_spill] sm:$0xff] }
 0x259   : > { %v1039_v2 = vsel %vm489_vm6, %v3274_v36, %v2753_v0  ;;  %v1073_v32 = vsel %vm525_vm9, %v3278_v8, %v1067_v19  ;;  %v1072_v29 = vsel %vm525_vm9, %v1067_v19, %v2776_v62  ;;  %v3282_v62 = vld [vmem:[#allocation49_spill] sm:$0xff]  ;;  %v3287_v8 = vld [vmem:[#allocation58_spill] sm:$0xff] }
 0x25a   : > { %v963_v57 = vadd.f32 %v961_v15, %v946_v5  ;;  %v964_v17 = vadd.f32 %v962_v52, %v947_v21  ;;  %v3275_v5 = vld [vmem:[#allocation24_spill] sm:$0xff]  ;;  %v3277_v15 = vld [vmem:[#allocation26_spill] sm:$0xff]  ;;  %v1079_v7 = vmul.f32 %v3279_v9, %v1073_v32  ;;  %v1132_v32 = vsel %vm588_vm1, %v2826_v26, %v3287_v8 }
 0x25b   : > { %v1045_v21 = vmul.f32 %v3275_v5, %v1039_v2  ;;  %v1046_v55 = vmul.f32 %v3275_v5, %v1038_v50  ;;  %v1062_v18 = vmul.f32 %v3277_v15, %v1056_v56  ;;  %v1115_v56 = vsel %vm570_vm0, %v2812_v51, %v3285_v6 }
 0x25c   : > { %v2834_v38 = vpop.permute.xlu0 %1195  ;;  %v1093_v25 = vpop.permute.xlu1 %1092  ;;  %v980_v40 = vadd.f32 %v978_v58, %v963_v57  ;;  %v981_v10 = vadd.f32 %v979_v53, %v964_v17  ;;  %v1063_v57 = vmul.f32 %v3277_v15, %v1055_v3  ;;  %v1080_v17 = vmul.f32 %v3279_v9, %v1072_v29  ;;  %v3280_v53 = vld [vmem:[#allocation48_spill] sm:$0xff]  ;;  %v3289_v29 = vld [vmem:[#allocation59_spill] sm:$0xff] }
 0x25d   : > { %v1099_v27 = vsel %vm552_vm14, %v1093_v25, %v2785_v42 }
 0x25e   : > { %v997_v46 = vadd.f32 %v995_v39, %v980_v40  ;;  %v998_v30 = vadd.f32 %v996_v13, %v981_v10  ;;  %v3281_v40 = vld [vmem:[#allocation22_spill] sm:$0xff]  ;;  %v3283_v10 = vld [vmem:[#allocation55_spill] sm:$0xff] }
 0x25f   : > { %v1088_v59 = vmul.f32 %v3281_v40, %v3280_v53  ;;  %v1089_v19 = vmul.f32 %v3281_v40, %v3282_v62  ;;  %v1098_v36 = vsel %vm552_vm14, %v2785_v42, %v3283_v10  ;;  %v3284_v13 = vld [vmem:[#allocation23_spill] sm:$0xff] }
 0x260   : > { %v2836_v63 = vpop.permute.xlu0 %1212  ;;  %v1110_v41 = vpop.permute.xlu1 %1109  ;;  %v1047_v31 = vadd.f32 %v1045_v21, %v997_v46  ;;  %v1048_v0 = vadd.f32 %v1046_v55, %v998_v30  ;;  %v1105_v46 = vmul.f32 %v3284_v13, %v1099_v27  ;;  %v1106_v21 = vmul.f32 %v3284_v13, %v1098_v36  ;;  %v3286_v55 = vld [vmem:[#allocation25_spill] sm:$0xff]  ;;  %v3291_v27 = vld [vmem:[#allocation60_spill] sm:$0xff] }
 0x261   : > { %v1116_v25 = vsel %vm570_vm0, %v1110_v41, %v2812_v51  ;;  %v1123_v41 = vmul.f32 %v3286_v55, %v1115_v56  ;;  %v3288_v51 = vld [vmem:[#allocation27_spill] sm:$0xff] }
 0x262   : > { %v1064_v37 = vadd.f32 %v1062_v18, %v1047_v31  ;;  %v1065_v1 = vadd.f32 %v1063_v57, %v1048_v0  ;;  %v1122_v31 = vmul.f32 %v3286_v55, %v1116_v25 }
 0x264   : > { %v2838_v48 = vpop.permute.xlu0 %1236  ;;  %v2840_v61 = vpop.permute.xlu1 %1126  ;;  %v1081_v43 = vadd.f32 %v1079_v7, %v1064_v37  ;;  %v1082_v14 = vadd.f32 %v1080_v17, %v1065_v1 }
 0x265   : > { %v1133_v3 = vsel %vm588_vm1, %v2840_v61, %v2826_v26  ;;  %v1140_v61 = vmul.f32 %v3288_v51, %v1132_v32 }
 0x266   : > { %v1090_v39 = vadd.f32 %v1088_v59, %v1081_v43  ;;  %v1091_v2 = vadd.f32 %v1089_v19, %v1082_v14  ;;  %v1139_v57 = vmul.f32 %v3288_v51, %v1133_v3  ;;  %v3290_v14 = vld [vmem:[#allocation30_spill] sm:$0xff]  ;;  %v3292_v19 = vld [vmem:[#allocation29_spill] sm:$0xff]  ;;  %v3297_v51 = vld [vmem:[#allocation35_spill] sm:$0xff] }
 0x268   : > { %v2842_v44 = vpop.permute.xlu0 %1253  ;;  %v2844_v33 = vpop.permute.xlu1 %1176  ;;  %v1107_v30 = vadd.f32 %v1105_v46, %v1090_v39  ;;  %v1108_v42 = vadd.f32 %v1106_v21, %v1091_v2 }
 0x269   : > { %v1183_v1 = vsel %vm489_vm6, %v3289_v29, %v2844_v33  ;;  %v1182_v17 = vsel %vm489_vm6, %v2844_v33, %v2832_v16 }
 0x26a   : > { %v1124_v18 = vadd.f32 %v1122_v31, %v1107_v30  ;;  %v1125_v37 = vadd.f32 %v1123_v41, %v1108_v42  ;;  %v1189_v53 = vmul.f32 %v3290_v14, %v1183_v1  ;;  %v1190_v16 = vmul.f32 %v3290_v14, %v1182_v17  ;;  %v3296_v41 = vld [vmem:[#allocation56_spill] sm:$0xff] }
 0x26c   : > { %v2846_v45 = vpop.permute.xlu0 %1257  ;;  %v2856_v11 = vpop.permute.xlu1 %1193  ;;  %v1141_v9 = vadd.f32 %v1139_v57, %v1124_v18  ;;  %v1142_v43 = vadd.f32 %v1140_v61, %v1125_v37 }
 0x26d   : > { %v1200_v26 = vsel %vm507_vm8, %v2553_v22, %v2856_v11  ;;  %v1199_v59 = vsel %vm507_vm8, %v2856_v11, %v2834_v38  ;;  %v3293_v38 = vld [vmem:[#allocation31_spill] sm:$0xff] }
 0x26e   : > { %v1191_v33 = vadd.f32 %v1189_v53, %v1141_v9  ;;  %v1206_v39 = vmul.f32 %v3292_v19, %v1200_v26  ;;  %v1192_v36 = vadd.f32 %v1190_v16, %v1142_v43  ;;  %v1207_v2 = vmul.f32 %v3292_v19, %v1199_v59 }
 0x270   : > { %v2859_v24 = vpop.permute.xlu0 %1270  ;;  %v2877_v35 = vpop.permute.xlu1 %1210  ;;  %v1208_v46 = vadd.f32 %v1206_v39, %v1191_v33  ;;  %v1209_v30 = vadd.f32 %v1207_v2, %v1192_v36 }
 0x271   : > { %v1217_v62 = vsel %vm525_vm9, %v3291_v27, %v2877_v35  ;;  %v1216_v10 = vsel %vm525_vm9, %v2877_v35, %v2836_v63  ;;  %v3294_v63 = vld [vmem:[#allocation50_spill] sm:$0xff]  ;;  %v3295_v35 = vld [vmem:[#allocation33_spill] sm:$0xff] }
 0x272   : > { %v1223_v11 = vmul.f32 %v3293_v38, %v1217_v62  ;;  %v1224_v25 = vmul.f32 %v3293_v38, %v1216_v10  ;;  %v1232_v55 = vmul.f32 %v3295_v35, %v3294_v63  ;;  %v1233_v32 = vmul.f32 %v3295_v35, %v2342_v47 }
 0x274   : > { %v2871_v4 = vpop.permute.xlu0 %1274  ;;  %v2895_v54 = vpop.permute.xlu1 %1238  ;;  %v1225_v6 = vadd.f32 %v1223_v11, %v1208_v46  ;;  %v1226_v42 = vadd.f32 %v1224_v25, %v1209_v30 }
 0x275   : > { %v1243_v56 = vsel %vm552_vm14, %v2838_v48, %v2895_v54  ;;  %v1242_v18 = vsel %vm552_vm14, %v2895_v54, %v3296_v41 }
 0x276   : > { %v1234_v48 = vadd.f32 %v1232_v55, %v1225_v6  ;;  %v1249_v57 = vmul.f32 %v3297_v51, %v1243_v56  ;;  %v1235_v29 = vadd.f32 %v1233_v32, %v1226_v42  ;;  %v1250_v1 = vmul.f32 %v3297_v51, %v1242_v18 }
 0x278   : > { %v2890_v23 = vpop.permute.xlu0 %1320  ;;  %v2912_v52 = vpop.permute.xlu1 %1255  ;;  %v1251_v17 = vadd.f32 %v1249_v57, %v1234_v48  ;;  %v1252_v14 = vadd.f32 %v1250_v1, %v1235_v29 }
 0x279   : > { %v1260_v8 = vsel %vm570_vm0, %v2842_v44, %v2912_v52  ;;  %v1259_v37 = vsel %vm570_vm0, %v2912_v52, %v2846_v45  ;;  %v3298_v44 = vld [vmem:[#allocation32_spill] sm:$0xff]  ;;  %v3299_v45 = vld [vmem:[#allocation34_spill] sm:$0xff] }
 0x27a   : > { %v1266_v61 = vmul.f32 %v3298_v44, %v1260_v8  ;;  %v1267_v26 = vmul.f32 %v3298_v44, %v1259_v37 }
 0x27c   : > { %v2907_v12 = vpop.permute.xlu0 %1324  ;;  %v1268_v53 = vadd.f32 %v1266_v61, %v1251_v17 }
 0x27d   : > { %v1327_v33 = vsel %vm489_vm6, %v2907_v12, %v2890_v23 }
 0x280   : > { %v2922_v60 = vpop.permute.xlu0 %1337 }
 0x284   : > { %v2938_v50 = vpop.permute.xlu0 %1341 }
 0x285   : > { %v2919_v58 = vpop.permute.xlu1 %1330  ;;  %v1344_v2 = vsel %vm507_vm8, %v2938_v50, %v2922_v60 }
 0x286   : > { %v1333_v19 = vmul.f32 %v2919_v58, %v1327_v33 }
 0x288   : > { %v2956_v0 = vpop.permute.xlu0 %1354 }
 0x289   : > { %v2929_v28 = vpop.permute.xlu1 %1272 }
 0x28a   : > { %v1277_v54 = vsel %vm588_vm1, %v2859_v24, %v2929_v28  ;;  %v1276_v47 = vsel %vm588_vm1, %v2929_v28, %v2871_v4  ;;  %v1269_v4 = vadd.f32 %v1267_v26, %v1252_v14 }
 0x28b   : > { %v1283_v52 = vmul.f32 %v3299_v45, %v1277_v54  ;;  %v1284_v59 = vmul.f32 %v3299_v45, %v1276_v47 }
 0x28c   : > { %v1359_v40 = vpop.permute.xlu0 %1358 }
 0x28d   : > { %v2943_v5 = vpop.permute.xlu1 %1347  ;;  %v1285_v28 = vadd.f32 %v1283_v52, %v1268_v53  ;;  %v1286_v39 = vadd.f32 %v1284_v59, %v1269_v4  ;;  %v1646_v53 = vld [vmem:[%s1827_s26 + $0x8] sm:$0xff] }
 0x28e   : > { %v1350_v11 = vmul.f32 %v2943_v5, %v1344_v2 }
 0x28f   : > { %v1335_v38 = vadd.f32 %v1333_v19, %v1285_v28 }
 0x291   : > { %v1323_v15 = vpop.permute.xlu1 %1322  ;;  %v1352_v50 = vadd.f32 %v1350_v11, %v1335_v38 }
 0x292   : > { %v1326_v24 = vsel %vm489_vm6, %v2890_v23, %v1323_v15 }
 0x293   : > { %v1334_v16 = vmul.f32 %v2919_v58, %v1326_v24  ;;  %v1361_v58 = vsel %vm525_vm9, %v1359_v40, %v2956_v0  ;;  %v1645_v24 = vld [vmem:[%s1827_s26] sm:$0xff] }
 0x295   : > { %v2968_v7 = vpop.permute.xlu1 %1364  ;;  %v1336_v23 = vadd.f32 %v1334_v16, %v1286_v39 }
 0x296   : > { %v1367_v46 = vmul.f32 %v2968_v7, %v1361_v58 }
 0x298   : > { %v1369_v35 = vadd.f32 %v1367_v46, %v1352_v50 }
 0x299   : > { %v1340_v22 = vpop.permute.xlu1 %1339  ;;  %v2995_v13 = vpop.permute.xlu0 %1407 }
 0x29a   : > { %v1343_v62 = vsel %vm507_vm8, %v2922_v60, %v1340_v22 }
 0x29b   : > { %v1351_v10 = vmul.f32 %v2943_v5, %v1343_v62 }
 0x29d   : > { %v1374_v21 = vpop.permute.xlu1 %1373  ;;  %v1383_v31 = vpop.permute.xlu0 %1382  ;;  %v1353_v25 = vadd.f32 %v1351_v10, %v1336_v23 }
 0x29e   : > { %v1376_v5 = vmul.f32 %v1374_v21, %v2573_v34 }
 0x2a0   : > { %v1378_v41 = vadd.f32 %v1376_v5, %v1369_v35 }
 0x2a1   : > { %v1357_v3 = vpop.permute.xlu1 %1356  ;;  %v1425_v43 = vpop.permute.xlu0 %1424 }
 0x2a2   : > { %v1360_v15 = vsel %vm525_vm9, %v2956_v0, %v1357_v3  ;;  %v1377_v0 = vmul.f32 %v1374_v21, %v2625_v20 }
 0x2a3   : > { %v1368_v12 = vmul.f32 %v2968_v7, %v1360_v15 }
 0x2a5   : > { %v1391_v9 = vpop.permute.xlu1 %1390  ;;  %v1400_v36 = vpop.permute.xlu0 %1399  ;;  %v1370_v56 = vadd.f32 %v1368_v12, %v1353_v25 }
 0x2a7   : > { %v1379_v18 = vadd.f32 %v1377_v0, %v1370_v56 }
 0x2a9   : > { %v1381_v27 = vpop.permute.xlu1 %1380  ;;  %v1415_v42 = vpop.permute.xlu0 %1414 }
 0x2aa   : > { %v1387_v6 = vsel %vm552_vm14, %v1381_v27, %v1383_v31 }
 0x2ab   : > { %v1393_v7 = vmul.f32 %v1391_v9, %v1387_v6 }
 0x2ad   : > { %v1385_v22 = vpop.permute.xlu1 %1384  ;;  %v1395_v8 = vadd.f32 %v1393_v7, %v1378_v41  ;;  %v1419_v32 = vpop.permute.xlu0 %1418 }
 0x2ae   : > { %v1386_v60 = vsel %vm552_vm14, %v1383_v31, %v1385_v22 }
 0x2af   : > { %v1394_v40 = vmul.f32 %v1391_v9, %v1386_v60 }
 0x2b1   : > { %v1398_v30 = vpop.permute.xlu1 %1397  ;;  %v1396_v48 = vadd.f32 %v1394_v40, %v1379_v18 }
 0x2b2   : > { %v1404_v63 = vsel %vm570_vm0, %v1398_v30, %v1400_v36 }
 0x2b3   : > { %v1410_v31 = vmul.f32 %v2995_v13, %v1404_v63 }
 0x2b5   : > { %v1402_v55 = vpop.permute.xlu1 %1401  ;;  %v1412_v21 = vadd.f32 %v1410_v31, %v1395_v8 }
 0x2b6   : > { %v1403_v3 = vsel %vm570_vm0, %v1400_v36, %v1402_v55 }
 0x2b7   : > { %v1411_v34 = vmul.f32 %v2995_v13, %v1403_v3 }
 0x2b9   : > { %v1417_v51 = vpop.permute.xlu1 %1416  ;;  %v1413_v37 = vadd.f32 %v1411_v34, %v1396_v48 }
 0x2ba   : > { %v1420_v57 = vsel %vm588_vm1, %v1417_v51, %v1419_v32  ;;  %v1421_v20 = vsel %vm588_vm1, %v1415_v42, %v1417_v51 }
 0x2bb   : > { %v1427_v54 = vmul.f32 %v1425_v43, %v1421_v20  ;;  %v1428_v29 = vmul.f32 %v1425_v43, %v1420_v57 }
 0x2bd   : > { %v1429_v1 = vadd.f32 %v1427_v54, %v1412_v21  ;;  %v1430_v44 = vadd.f32 %v1428_v29, %v1413_v37 }
 0x2bf   : > { %v1431_v61 = vsub.f32 0.0, %v1429_v1  ;;  %v1432_v13 = vsub.f32 0.0, %v1430_v44 }
 0x2c1   : > { %v1433_v9 = vmul.f32 1.442695, %v1431_v61  ;;  %v1435_v47 = vmul.f32 1.442695, %v1432_v13 }
 0x2c3   : > { %1637 = vpow2.f32 %v1433_v9 }
 0x2c4   : > { %1639 = vpow2.f32 %v1435_v47 }
 0x2d0   : > { %v1638_v17 = vpop.eup %1637 }
 0x2d1   : > { %v1640_v26 = vpop.eup %1639  ;;  %v1437_v49 = vadd.f32 1.0, %v1638_v17 }
 0x2d2   : > { %v1438_v45 = vadd.f32 1.0, %v1640_v26 }
 0x2d3   : > { %1641 = vrcp.f32 %v1437_v49 }
 0x2d4   : > { %1643 = vrcp.f32 %v1438_v45 }
 0x2e0   : > { %v1642_v52 = vpop.eup %1641 }
 0x2e1   : > { %v1644_v43 = vpop.eup %1643  ;;  %v1441_v14 = vmul.f32 %v1645_v24, %v1642_v52 }
 0x2e2   : > { %v1442_v59 = vmul.f32 %v1646_v53, %v1644_v43 }
 0x2e3   : > { %1443 = vst [vmem:[%s244_s10] sm:$0xff] %v1441_v14 }
 0x2e4   : > { %1444 = vst [vmem:[%s244_s10 + $0x8] sm:$0xff] %v1442_v59 }
 0x2e5   : > { %1660 = shalt.err (!%p1657_p3)
}
 0x2e6   : > { %s1661_s26 = scalar_lea.hbm %s3081_s29, 256  ;;  %s1665_s28 = scalar_lea.hbm %s3122_s6, 512 }
 0x2e7   : > { %p1662_p4 = scmp.ne.s32.totalorder %s3081_s29, %s1661_s26  ;;  %p1666_p9 = scmp.lt.s32.totalorder %s3081_s29, %s3122_s6 }
 0x2e8   : > { %p1667_p10 = scmp.lt.s32.totalorder %s1665_s28, %s1661_s26 }
 0x2e9   : > { %p1663_p7 = pnand %p1662_p4, %p1797_p5 }
 0x2ea   : > { %p1668_p11 = por %p1667_p10, %p1666_p9 }
 0x2eb   : > { %p1664_p8 = pneg %p1663_p7 }
 0x2ed   : > { %p1669_p12 = pnand %p1668_p11, %p1664_p8 }
 0x2ef   : > { %1672 = shalt.err (!%p1669_p12)
}
 0x2f0   : > { %1582 = dma.vmem_to_hbm [thread:$0]  (%p1797_p5), %s1461_s14, 256, %s3081_s29, %s1446_s9  }
 0x2f1 PF: > { %p1588_p13 = scmp.ge.s32.totalorder %s1707_s24, 2  ;;  %s1472_s10 = sand.u32 1, %s1695_s21  }
 0x2f2   : > { %s1473_s12 = scalar_lea.sflag [#allocation4], %s1472_s10 }
 0x2f3   : > { %p1585_p0 = pnand %p1588_p13, %p1801_p6 }
 0x2f5   : > { %p1586_p1 = pneg %p1585_p0 }
 0x2f7   : > { %1690 = dma.done.wait (%p1586_p1), %s1473_s12, 256  }
 0x2f8   : > { %1692 = vsyncadd (%p1586_p1), %s1473_s12, 4294967040  ;;  %p16_p2 = scmp.ge.s32.totalorder %s1784_s27, 4   ;;  %s3300_s21 = smov %s1699_s22 }
 0x2f9   : > { %s3301_s22 = smov %s1703_s23  ;;  %s3302_s23 = smov %s1795_s30 }
 0x2fa   : > { %s3303_s24 = smov %s1784_s27  ;;  %18 = sbr.rel (!%p16_p2) target bundleno = 3 (0x3), region = 127 }
 0x2ff   :  { %1478 = vsyncpa [#allocation4], 1 }
 0x300   :  { %1480 = vsyncpa [#allocation4 + $0x1], 1 }

</bundles_post_ra>
